<compile_context>
chip_gen: v7x
topology: tpu7x:2x2x1
jax: 0.10.0
libtpu: 0.0.40
codegen_flags: <defaults>
</compile_context>

<pallas_src>
import functools

import jax
import jax.numpy as jnp
from jax import lax
from jax.experimental import pallas as pl
from jax.experimental.pallas import tpu as pltpu

_LANE = 128
_SUBLANE = 8
# Weight-stack bytes above which we abandon whole-stack VMEM residency and
# stream weights per layer (keeps v7x's 64 MiB/TC VMEM safe with headroom).
_RESIDENT_WEIGHT_BYTES = 48 * (1 << 20)
_MAX_BATCH_TILE = 256


def _round_up(n, m):
    return (n + m - 1) // m * m


def _softplus(x):
    # Numerically stable softplus: max(x,0) + log1p(exp(-|x|)); exp/log1p hit
    # the EUP slot, which is otherwise idle here.
    return jnp.maximum(x, 0.0) + jnp.log1p(jnp.exp(-jnp.abs(x)))


def _vmem_limit(nbytes):
    # ~25% headroom, floored at the default scoped limit, capped well under
    # physical VMEM on all generations we target.
    return int(min(max(int(nbytes * 1.25), 32 * (1 << 20)), 96 * (1 << 20)))


# ----------------------------------------------------------------------------
# Kernels
# ----------------------------------------------------------------------------
def _resident_kernel(x_ref, w_ref, o_ref, *, unroll):
    """All L layers for one batch tile; whole bf16 weight stack in VMEM.

    x_ref: (TB, Dp) f32    activation tile
    w_ref: (L, Dp, Dp) bf16 whole weight stack (VMEM-resident, not pipelined)
    o_ref: (TB, Dp) f32    output tile
    """
    n_layers = w_ref.shape[0]

    def body(l, act):
        lin = jnp.dot(act.astype(jnp.bfloat16), w_ref[l],
                      preferred_element_type=jnp.float32)
        return act - _softplus(lin)  # elementwise math stays in f32

    o_ref[...] = lax.fori_loop(0, n_layers, body,
                               x_ref[...].astype(jnp.float32), unroll=unroll)


def _streaming_kernel(x_ref, w_ref, o_ref, acc_ref):
    """grid = (batch_tiles, L); one bf16 weight matrix streamed per layer.

    x_ref:   (TB, Dp) f32   input tile (resident across the layer axis)
    w_ref:   (1, Dp, Dp) bf16 weight tile for layer l (double-buffered DMA)
    o_ref:   (TB, Dp) f32   output tile (written only on the last layer)
    acc_ref: (TB, Dp) f32   VMEM scratch carrying the activation
    """
    l = pl.program_id(1)

    @pl.when(l == 0)
    def _():
        acc_ref[...] = x_ref[...].astype(jnp.float32)

    act = acc_ref[...]
    lin = jnp.dot(act.astype(jnp.bfloat16), w_ref[0],
                  preferred_element_type=jnp.float32)
    acc_ref[...] = act - _softplus(lin)

    @pl.when(l == pl.num_programs(1) - 1)
    def _():
        o_ref[...] = acc_ref[...]


# ----------------------------------------------------------------------------
# Wrappers
# ----------------------------------------------------------------------------
def prepare_weights(weights):
    """One-time weight prep: pad (L, D, D) to (L, Dp, Dp), cast to bf16.

    Zero padding is applied BEFORE the cast (bf16(0) == 0), so padded
    rows/columns stay exactly zero and never leak into real lanes.
    Call once and reuse across forward calls (avoids re-materializing the
    padded stack in HBM on every call).
    """
    L, D, _ = weights.shape
    Dp = _round_up(D, _LANE)
    w = jnp.asarray(weights, jnp.float32)
    if Dp != D:
        w = jnp.zeros((L, Dp, Dp), jnp.float32).at[:, :D, :D].set(w)
    return w.astype(jnp.bfloat16)


@functools.partial(jax.jit, static_argnames=("force_streaming",))
def resnet_forward(x, w_padded, *, force_streaming=False):
    """x: (B, D) float, w_padded: (L, Dp, Dp) bf16 from prepare_weights()."""
    B, D = x.shape
    L, Dp, _ = w_padded.shape

    # Batch tiling: multiple of 8 sublanes; cap the tile so activations stay
    # small and large batches shard across TensorCores via the parallel axis.
    if B > _MAX_BATCH_TILE:
        TB = _MAX_BATCH_TILE
        Bp = _round_up(B, TB)
    else:
        Bp = _round_up(B, _SUBLANE)
        TB = Bp
    n_btiles = Bp // TB

    x_p = x.astype(jnp.float32)
    if (Bp, Dp) != (B, D):
        x_p = jnp.zeros((Bp, Dp), jnp.float32).at[:B, :D].set(x_p)

    weight_bytes = L * Dp * Dp * 2  # bf16

    if weight_bytes <= _RESIDENT_WEIGHT_BYTES and not force_streaming:
        # Whole-stack-resident path.
        act_bytes = 2 * 2 * TB * Dp * 4  # double-buffered x + out tiles
        unroll = True if L <= 16 else 4  # avoid vreg-pressure blowup at big L
        out_p = pl.pallas_call(
            functools.partial(_resident_kernel, unroll=unroll),
            out_shape=jax.ShapeDtypeStruct((Bp, Dp), jnp.float32),
            grid=(n_btiles,),
            in_specs=[
                pl.BlockSpec((TB, Dp), lambda b: (b, 0)),
                pl.BlockSpec(memory_space=pltpu.MemorySpace.VMEM),  # full stack
            ],
            out_specs=pl.BlockSpec((TB, Dp), lambda b: (b, 0)),
            compiler_params=pltpu.CompilerParams(
                dimension_semantics=("parallel",),
                vmem_limit_bytes=_vmem_limit(weight_bytes + act_bytes),
            ),
        )(x_p, w_padded)
    else:
        # Per-layer weight-streaming path (weight DMA of layer l+1 overlaps
        # compute of layer l via default double buffering).
        stream_bytes = (2 * Dp * Dp * 2       # double-buffered weight tile
                        + 2 * 2 * TB * Dp * 4  # x / out tiles
                        + TB * Dp * 4)         # scratch accumulator
        out_p = pl.pallas_call(
            _streaming_kernel,
            out_shape=jax.ShapeDtypeStruct((Bp, Dp), jnp.float32),
            grid=(n_btiles, L),
            in_specs=[
                pl.BlockSpec((TB, Dp), lambda b, l: (b, 0)),
                pl.BlockSpec((1, Dp, Dp), lambda b, l: (l, 0, 0)),
            ],
            out_specs=pl.BlockSpec((TB, Dp), lambda b, l: (b, 0)),
            scratch_shapes=[pltpu.VMEM((TB, Dp), jnp.float32)],
            compiler_params=pltpu.CompilerParams(
                dimension_semantics=("parallel", "arbitrary"),
                vmem_limit_bytes=_vmem_limit(stream_bytes),
            ),
        )(x_p, w_padded)

    if (Bp, Dp) != (B, D):
        return out_p[:B, :D]
    return out_p


def resnet_reference(x, weights):
    """Pure-JAX f32 reference of the PyTorch forward."""
    out = x.astype(jnp.float32)
    for l in range(weights.shape[0]):
        lin = out @ weights[l]
        out = out - _softplus(lin)
    return out


# ----------------------------------------------------------------------------
if __name__ == "__main__":
    # Small shapes consistent with the module: n_in == n_out == D, 16 layers.
    # NOTE: at B=8 the MXU sees only an 8-row LHS (~3-6% row utilization); the
    # kernel is latency/overhead bound here by construction — larger batches
    # use the same code with batch tiling + the parallel grid axis.
    B, D, L = 8, 32, 16

    key = jax.random.PRNGKey(0)
    x = jax.random.normal(key, (B, D), dtype=jnp.float32)

    # Module init: each layer's W = eye(n_out).
    weights = jnp.broadcast_to(jnp.eye(D, dtype=jnp.float32), (L, D, D))

    w_padded = prepare_weights(weights)  # one-time pad + bf16 cast

    out = jax.block_until_ready(resnet_forward(x, w_padded))
    out_stream = jax.block_until_ready(
        resnet_forward(x, w_padded, force_streaming=True))

    ref = resnet_reference(x, weights)
    assert out.shape == (B, D)
    # bf16 MXU operands (f32 accumulate) -> looser tolerance vs pure-f32 ref.
    assert jnp.allclose(out, ref, atol=5e-2, rtol=5e-2), "mismatch vs reference"
    # Resident and streaming paths must agree with each other tightly.
    assert jnp.allclose(out_stream, out, atol=1e-5, rtol=1e-5), "path mismatch"

    print("KERNEL_OK")
</pallas_src>

<mosaic_0001>
module attributes {stable_mosaic.version = 11 : i64} {
  func.func @_resident_kernel(%arg0: i32, %arg1: memref<8x128xf32, #tpu.memory_space<vmem>>, %arg2: memref<16x128x128xbf16, #tpu.memory_space<vmem>>, %arg3: memref<8x128xf32, #tpu.memory_space<vmem>>) attributes {dimension_semantics = [#tpu.dimension_semantics<parallel>], iteration_bounds = array<i64: 1>, scalar_prefetch = 0 : i64, scratch_operands = 0 : i64, tpu.core_type = #tpu.core_type<tc>, window_params = [{transform_indices = @transform_0, window_bounds = array<i64: 8, 128>}, {pipeline_mode = #tpu.pipeline_mode<synchronous>, transform_indices = @transform_1, window_bounds = array<i64: 16, 128, 128>}, {transform_indices = @transform_2, window_bounds = array<i64: 8, 128>}]} {
    %c0 = arith.constant 0 : index
    %c0_0 = arith.constant 0 : index
    %0 = vector.load %arg1[%c0, %c0_0] : memref<8x128xf32, #tpu.memory_space<vmem>>, vector<8x128xf32>
    %c0_i32 = arith.constant 0 : i32
    %1 = arith.truncf %0 : vector<8x128xf32> to vector<8x128xbf16>
    %2 = arith.index_cast %c0_i32 : i32 to index
    %c0_1 = arith.constant 0 : index
    %c0_2 = arith.constant 0 : index
    %3 = vector.load %arg2[%2, %c0_1, %c0_2] : memref<16x128x128xbf16, #tpu.memory_space<vmem>>, vector<1x128x128xbf16>
    %4 = vector.shape_cast %3 : vector<1x128x128xbf16> to vector<128x128xbf16>
    %cst = arith.constant dense<0.000000e+00> : vector<8x128xf32>
    %5 = tpu.matmul %1, %4, %cst {dimension_numbers = #tpu.dot_dimension_numbers<[1], [0], [0], [1], [0, 0, 1, 1], [], []>} : vector<8x128xbf16>, vector<128x128xbf16>, vector<8x128xf32> -> vector<8x128xf32>
    %cst_3 = arith.constant 0.000000e+00 : f32
    %6 = vector.broadcast %cst_3 : f32 to vector<8x128xf32>
    %7 = arith.maximumf %5, %6 : vector<8x128xf32>
    %8 = math.absf %5 : vector<8x128xf32>
    %cst_4 = arith.constant 0.000000e+00 : f32
    %9 = vector.broadcast %cst_4 : f32 to vector<8x128xf32>
    %10 = arith.subf %9, %8 : vector<8x128xf32>
    %11 = math.exp %10 : vector<8x128xf32>
    %12 = math.log1p %11 : vector<8x128xf32>
    %13 = arith.addf %7, %12 : vector<8x128xf32>
    %14 = arith.subf %0, %13 : vector<8x128xf32>
    %c1_i32 = arith.constant 1 : i32
    %15 = arith.truncf %14 : vector<8x128xf32> to vector<8x128xbf16>
    %16 = arith.index_cast %c1_i32 : i32 to index
    %c0_5 = arith.constant 0 : index
    %c0_6 = arith.constant 0 : index
    %17 = vector.load %arg2[%16, %c0_5, %c0_6] : memref<16x128x128xbf16, #tpu.memory_space<vmem>>, vector<1x128x128xbf16>
    %18 = vector.shape_cast %17 : vector<1x128x128xbf16> to vector<128x128xbf16>
    %cst_7 = arith.constant dense<0.000000e+00> : vector<8x128xf32>
    %19 = tpu.matmul %15, %18, %cst_7 {dimension_numbers = #tpu.dot_dimension_numbers<[1], [0], [0], [1], [0, 0, 1, 1], [], []>} : vector<8x128xbf16>, vector<128x128xbf16>, vector<8x128xf32> -> vector<8x128xf32>
    %cst_8 = arith.constant 0.000000e+00 : f32
    %20 = vector.broadcast %cst_8 : f32 to vector<8x128xf32>
    %21 = arith.maximumf %19, %20 : vector<8x128xf32>
    %22 = math.absf %19 : vector<8x128xf32>
    %cst_9 = arith.constant 0.000000e+00 : f32
    %23 = vector.broadcast %cst_9 : f32 to vector<8x128xf32>
    %24 = arith.subf %23, %22 : vector<8x128xf32>
    %25 = math.exp %24 : vector<8x128xf32>
    %26 = math.log1p %25 : vector<8x128xf32>
    %27 = arith.addf %21, %26 : vector<8x128xf32>
    %28 = arith.subf %14, %27 : vector<8x128xf32>
    %c2_i32 = arith.constant 2 : i32
    %29 = arith.truncf %28 : vector<8x128xf32> to vector<8x128xbf16>
    %30 = arith.index_cast %c2_i32 : i32 to index
    %c0_10 = arith.constant 0 : index
    %c0_11 = arith.constant 0 : index
    %31 = vector.load %arg2[%30, %c0_10, %c0_11] : memref<16x128x128xbf16, #tpu.memory_space<vmem>>, vector<1x128x128xbf16>
    %32 = vector.shape_cast %31 : vector<1x128x128xbf16> to vector<128x128xbf16>
    %cst_12 = arith.constant dense<0.000000e+00> : vector<8x128xf32>
    %33 = tpu.matmul %29, %32, %cst_12 {dimension_numbers = #tpu.dot_dimension_numbers<[1], [0], [0], [1], [0, 0, 1, 1], [], []>} : vector<8x128xbf16>, vector<128x128xbf16>, vector<8x128xf32> -> vector<8x128xf32>
    %cst_13 = arith.constant 0.000000e+00 : f32
    %34 = vector.broadcast %cst_13 : f32 to vector<8x128xf32>
    %35 = arith.maximumf %33, %34 : vector<8x128xf32>
    %36 = math.absf %33 : vector<8x128xf32>
    %cst_14 = arith.constant 0.000000e+00 : f32
    %37 = vector.broadcast %cst_14 : f32 to vector<8x128xf32>
    %38 = arith.subf %37, %36 : vector<8x128xf32>
    %39 = math.exp %38 : vector<8x128xf32>
    %40 = math.log1p %39 : vector<8x128xf32>
    %41 = arith.addf %35, %40 : vector<8x128xf32>
    %42 = arith.subf %28, %41 : vector<8x128xf32>
    %c3_i32 = arith.constant 3 : i32
    %43 = arith.truncf %42 : vector<8x128xf32> to vector<8x128xbf16>
    %44 = arith.index_cast %c3_i32 : i32 to index
    %c0_15 = arith.constant 0 : index
    %c0_16 = arith.constant 0 : index
    %45 = vector.load %arg2[%44, %c0_15, %c0_16] : memref<16x128x128xbf16, #tpu.memory_space<vmem>>, vector<1x128x128xbf16>
    %46 = vector.shape_cast %45 : vector<1x128x128xbf16> to vector<128x128xbf16>
    %cst_17 = arith.constant dense<0.000000e+00> : vector<8x128xf32>
    %47 = tpu.matmul %43, %46, %cst_17 {dimension_numbers = #tpu.dot_dimension_numbers<[1], [0], [0], [1], [0, 0, 1, 1], [], []>} : vector<8x128xbf16>, vector<128x128xbf16>, vector<8x128xf32> -> vector<8x128xf32>
    %cst_18 = arith.constant 0.000000e+00 : f32
    %48 = vector.broadcast %cst_18 : f32 to vector<8x128xf32>
    %49 = arith.maximumf %47, %48 : vector<8x128xf32>
    %50 = math.absf %47 : vector<8x128xf32>
    %cst_19 = arith.constant 0.000000e+00 : f32
    %51 = vector.broadcast %cst_19 : f32 to vector<8x128xf32>
    %52 = arith.subf %51, %50 : vector<8x128xf32>
    %53 = math.exp %52 : vector<8x128xf32>
    %54 = math.log1p %53 : vector<8x128xf32>
    %55 = arith.addf %49, %54 : vector<8x128xf32>
    %56 = arith.subf %42, %55 : vector<8x128xf32>
    %c4_i32 = arith.constant 4 : i32
    %57 = arith.truncf %56 : vector<8x128xf32> to vector<8x128xbf16>
    %58 = arith.index_cast %c4_i32 : i32 to index
    %c0_20 = arith.constant 0 : index
    %c0_21 = arith.constant 0 : index
    %59 = vector.load %arg2[%58, %c0_20, %c0_21] : memref<16x128x128xbf16, #tpu.memory_space<vmem>>, vector<1x128x128xbf16>
    %60 = vector.shape_cast %59 : vector<1x128x128xbf16> to vector<128x128xbf16>
    %cst_22 = arith.constant dense<0.000000e+00> : vector<8x128xf32>
    %61 = tpu.matmul %57, %60, %cst_22 {dimension_numbers = #tpu.dot_dimension_numbers<[1], [0], [0], [1], [0, 0, 1, 1], [], []>} : vector<8x128xbf16>, vector<128x128xbf16>, vector<8x128xf32> -> vector<8x128xf32>
    %cst_23 = arith.constant 0.000000e+00 : f32
    %62 = vector.broadcast %cst_23 : f32 to vector<8x128xf32>
    %63 = arith.maximumf %61, %62 : vector<8x128xf32>
    %64 = math.absf %61 : vector<8x128xf32>
    %cst_24 = arith.constant 0.000000e+00 : f32
    %65 = vector.broadcast %cst_24 : f32 to vector<8x128xf32>
    %66 = arith.subf %65, %64 : vector<8x128xf32>
    %67 = math.exp %66 : vector<8x128xf32>
    %68 = math.log1p %67 : vector<8x128xf32>
    %69 = arith.addf %63, %68 : vector<8x128xf32>
    %70 = arith.subf %56, %69 : vector<8x128xf32>
    %c5_i32 = arith.constant 5 : i32
    %71 = arith.truncf %70 : vector<8x128xf32> to vector<8x128xbf16>
    %72 = arith.index_cast %c5_i32 : i32 to index
    %c0_25 = arith.constant 0 : index
    %c0_26 = arith.constant 0 : index
    %73 = vector.load %arg2[%72, %c0_25, %c0_26] : memref<16x128x128xbf16, #tpu.memory_space<vmem>>, vector<1x128x128xbf16>
    %74 = vector.shape_cast %73 : vector<1x128x128xbf16> to vector<128x128xbf16>
    %cst_27 = arith.constant dense<0.000000e+00> : vector<8x128xf32>
    %75 = tpu.matmul %71, %74, %cst_27 {dimension_numbers = #tpu.dot_dimension_numbers<[1], [0], [0], [1], [0, 0, 1, 1], [], []>} : vector<8x128xbf16>, vector<128x128xbf16>, vector<8x128xf32> -> vector<8x128xf32>
    %cst_28 = arith.constant 0.000000e+00 : f32
    %76 = vector.broadcast %cst_28 : f32 to vector<8x128xf32>
    %77 = arith.maximumf %75, %76 : vector<8x128xf32>
    %78 = math.absf %75 : vector<8x128xf32>
    %cst_29 = arith.constant 0.000000e+00 : f32
    %79 = vector.broadcast %cst_29 : f32 to vector<8x128xf32>
    %80 = arith.subf %79, %78 : vector<8x128xf32>
    %81 = math.exp %80 : vector<8x128xf32>
    %82 = math.log1p %81 : vector<8x128xf32>
    %83 = arith.addf %77, %82 : vector<8x128xf32>
    %84 = arith.subf %70, %83 : vector<8x128xf32>
    %c6_i32 = arith.constant 6 : i32
    %85 = arith.truncf %84 : vector<8x128xf32> to vector<8x128xbf16>
    %86 = arith.index_cast %c6_i32 : i32 to index
    %c0_30 = arith.constant 0 : index
    %c0_31 = arith.constant 0 : index
    %87 = vector.load %arg2[%86, %c0_30, %c0_31] : memref<16x128x128xbf16, #tpu.memory_space<vmem>>, vector<1x128x128xbf16>
    %88 = vector.shape_cast %87 : vector<1x128x128xbf16> to vector<128x128xbf16>
    %cst_32 = arith.constant dense<0.000000e+00> : vector<8x128xf32>
    %89 = tpu.matmul %85, %88, %cst_32 {dimension_numbers = #tpu.dot_dimension_numbers<[1], [0], [0], [1], [0, 0, 1, 1], [], []>} : vector<8x128xbf16>, vector<128x128xbf16>, vector<8x128xf32> -> vector<8x128xf32>
    %cst_33 = arith.constant 0.000000e+00 : f32
    %90 = vector.broadcast %cst_33 : f32 to vector<8x128xf32>
    %91 = arith.maximumf %89, %90 : vector<8x128xf32>
    %92 = math.absf %89 : vector<8x128xf32>
    %cst_34 = arith.constant 0.000000e+00 : f32
    %93 = vector.broadcast %cst_34 : f32 to vector<8x128xf32>
    %94 = arith.subf %93, %92 : vector<8x128xf32>
    %95 = math.exp %94 : vector<8x128xf32>
    %96 = math.log1p %95 : vector<8x128xf32>
    %97 = arith.addf %91, %96 : vector<8x128xf32>
    %98 = arith.subf %84, %97 : vector<8x128xf32>
    %c7_i32 = arith.constant 7 : i32
    %99 = arith.truncf %98 : vector<8x128xf32> to vector<8x128xbf16>
    %100 = arith.index_cast %c7_i32 : i32 to index
    %c0_35 = arith.constant 0 : index
    %c0_36 = arith.constant 0 : index
    %101 = vector.load %arg2[%100, %c0_35, %c0_36] : memref<16x128x128xbf16, #tpu.memory_space<vmem>>, vector<1x128x128xbf16>
    %102 = vector.shape_cast %101 : vector<1x128x128xbf16> to vector<128x128xbf16>
    %cst_37 = arith.constant dense<0.000000e+00> : vector<8x128xf32>
    %103 = tpu.matmul %99, %102, %cst_37 {dimension_numbers = #tpu.dot_dimension_numbers<[1], [0], [0], [1], [0, 0, 1, 1], [], []>} : vector<8x128xbf16>, vector<128x128xbf16>, vector<8x128xf32> -> vector<8x128xf32>
    %cst_38 = arith.constant 0.000000e+00 : f32
    %104 = vector.broadcast %cst_38 : f32 to vector<8x128xf32>
    %105 = arith.maximumf %103, %104 : vector<8x128xf32>
    %106 = math.absf %103 : vector<8x128xf32>
    %cst_39 = arith.constant 0.000000e+00 : f32
    %107 = vector.broadcast %cst_39 : f32 to vector<8x128xf32>
    %108 = arith.subf %107, %106 : vector<8x128xf32>
    %109 = math.exp %108 : vector<8x128xf32>
    %110 = math.log1p %109 : vector<8x128xf32>
    %111 = arith.addf %105, %110 : vector<8x128xf32>
    %112 = arith.subf %98, %111 : vector<8x128xf32>
    %c8_i32 = arith.constant 8 : i32
    %113 = arith.truncf %112 : vector<8x128xf32> to vector<8x128xbf16>
    %114 = arith.index_cast %c8_i32 : i32 to index
    %c0_40 = arith.constant 0 : index
    %c0_41 = arith.constant 0 : index
    %115 = vector.load %arg2[%114, %c0_40, %c0_41] : memref<16x128x128xbf16, #tpu.memory_space<vmem>>, vector<1x128x128xbf16>
    %116 = vector.shape_cast %115 : vector<1x128x128xbf16> to vector<128x128xbf16>
    %cst_42 = arith.constant dense<0.000000e+00> : vector<8x128xf32>
    %117 = tpu.matmul %113, %116, %cst_42 {dimension_numbers = #tpu.dot_dimension_numbers<[1], [0], [0], [1], [0, 0, 1, 1], [], []>} : vector<8x128xbf16>, vector<128x128xbf16>, vector<8x128xf32> -> vector<8x128xf32>
    %cst_43 = arith.constant 0.000000e+00 : f32
    %118 = vector.broadcast %cst_43 : f32 to vector<8x128xf32>
    %119 = arith.maximumf %117, %118 : vector<8x128xf32>
    %120 = math.absf %117 : vector<8x128xf32>
    %cst_44 = arith.constant 0.000000e+00 : f32
    %121 = vector.broadcast %cst_44 : f32 to vector<8x128xf32>
    %122 = arith.subf %121, %120 : vector<8x128xf32>
    %123 = math.exp %122 : vector<8x128xf32>
    %124 = math.log1p %123 : vector<8x128xf32>
    %125 = arith.addf %119, %124 : vector<8x128xf32>
    %126 = arith.subf %112, %125 : vector<8x128xf32>
    %c9_i32 = arith.constant 9 : i32
    %127 = arith.truncf %126 : vector<8x128xf32> to vector<8x128xbf16>
    %128 = arith.index_cast %c9_i32 : i32 to index
    %c0_45 = arith.constant 0 : index
    %c0_46 = arith.constant 0 : index
    %129 = vector.load %arg2[%128, %c0_45, %c0_46] : memref<16x128x128xbf16, #tpu.memory_space<vmem>>, vector<1x128x128xbf16>
    %130 = vector.shape_cast %129 : vector<1x128x128xbf16> to vector<128x128xbf16>
    %cst_47 = arith.constant dense<0.000000e+00> : vector<8x128xf32>
    %131 = tpu.matmul %127, %130, %cst_47 {dimension_numbers = #tpu.dot_dimension_numbers<[1], [0], [0], [1], [0, 0, 1, 1], [], []>} : vector<8x128xbf16>, vector<128x128xbf16>, vector<8x128xf32> -> vector<8x128xf32>
    %cst_48 = arith.constant 0.000000e+00 : f32
    %132 = vector.broadcast %cst_48 : f32 to vector<8x128xf32>
    %133 = arith.maximumf %131, %132 : vector<8x128xf32>
    %134 = math.absf %131 : vector<8x128xf32>
    %cst_49 = arith.constant 0.000000e+00 : f32
    %135 = vector.broadcast %cst_49 : f32 to vector<8x128xf32>
    %136 = arith.subf %135, %134 : vector<8x128xf32>
    %137 = math.exp %136 : vector<8x128xf32>
    %138 = math.log1p %137 : vector<8x128xf32>
    %139 = arith.addf %133, %138 : vector<8x128xf32>
    %140 = arith.subf %126, %139 : vector<8x128xf32>
    %c10_i32 = arith.constant 10 : i32
    %141 = arith.truncf %140 : vector<8x128xf32> to vector<8x128xbf16>
    %142 = arith.index_cast %c10_i32 : i32 to index
    %c0_50 = arith.constant 0 : index
    %c0_51 = arith.constant 0 : index
    %143 = vector.load %arg2[%142, %c0_50, %c0_51] : memref<16x128x128xbf16, #tpu.memory_space<vmem>>, vector<1x128x128xbf16>
    %144 = vector.shape_cast %143 : vector<1x128x128xbf16> to vector<128x128xbf16>
    %cst_52 = arith.constant dense<0.000000e+00> : vector<8x128xf32>
    %145 = tpu.matmul %141, %144, %cst_52 {dimension_numbers = #tpu.dot_dimension_numbers<[1], [0], [0], [1], [0, 0, 1, 1], [], []>} : vector<8x128xbf16>, vector<128x128xbf16>, vector<8x128xf32> -> vector<8x128xf32>
    %cst_53 = arith.constant 0.000000e+00 : f32
    %146 = vector.broadcast %cst_53 : f32 to vector<8x128xf32>
    %147 = arith.maximumf %145, %146 : vector<8x128xf32>
    %148 = math.absf %145 : vector<8x128xf32>
    %cst_54 = arith.constant 0.000000e+00 : f32
    %149 = vector.broadcast %cst_54 : f32 to vector<8x128xf32>
    %150 = arith.subf %149, %148 : vector<8x128xf32>
    %151 = math.exp %150 : vector<8x128xf32>
    %152 = math.log1p %151 : vector<8x128xf32>
    %153 = arith.addf %147, %152 : vector<8x128xf32>
    %154 = arith.subf %140, %153 : vector<8x128xf32>
    %c11_i32 = arith.constant 11 : i32
    %155 = arith.truncf %154 : vector<8x128xf32> to vector<8x128xbf16>
    %156 = arith.index_cast %c11_i32 : i32 to index
    %c0_55 = arith.constant 0 : index
    %c0_56 = arith.constant 0 : index
    %157 = vector.load %arg2[%156, %c0_55, %c0_56] : memref<16x128x128xbf16, #tpu.memory_space<vmem>>, vector<1x128x128xbf16>
    %158 = vector.shape_cast %157 : vector<1x128x128xbf16> to vector<128x128xbf16>
    %cst_57 = arith.constant dense<0.000000e+00> : vector<8x128xf32>
    %159 = tpu.matmul %155, %158, %cst_57 {dimension_numbers = #tpu.dot_dimension_numbers<[1], [0], [0], [1], [0, 0, 1, 1], [], []>} : vector<8x128xbf16>, vector<128x128xbf16>, vector<8x128xf32> -> vector<8x128xf32>
    %cst_58 = arith.constant 0.000000e+00 : f32
    %160 = vector.broadcast %cst_58 : f32 to vector<8x128xf32>
    %161 = arith.maximumf %159, %160 : vector<8x128xf32>
    %162 = math.absf %159 : vector<8x128xf32>
    %cst_59 = arith.constant 0.000000e+00 : f32
    %163 = vector.broadcast %cst_59 : f32 to vector<8x128xf32>
    %164 = arith.subf %163, %162 : vector<8x128xf32>
    %165 = math.exp %164 : vector<8x128xf32>
    %166 = math.log1p %165 : vector<8x128xf32>
    %167 = arith.addf %161, %166 : vector<8x128xf32>
    %168 = arith.subf %154, %167 : vector<8x128xf32>
    %c12_i32 = arith.constant 12 : i32
    %169 = arith.truncf %168 : vector<8x128xf32> to vector<8x128xbf16>
    %170 = arith.index_cast %c12_i32 : i32 to index
    %c0_60 = arith.constant 0 : index
    %c0_61 = arith.constant 0 : index
    %171 = vector.load %arg2[%170, %c0_60, %c0_61] : memref<16x128x128xbf16, #tpu.memory_space<vmem>>, vector<1x128x128xbf16>
    %172 = vector.shape_cast %171 : vector<1x128x128xbf16> to vector<128x128xbf16>
    %cst_62 = arith.constant dense<0.000000e+00> : vector<8x128xf32>
    %173 = tpu.matmul %169, %172, %cst_62 {dimension_numbers = #tpu.dot_dimension_numbers<[1], [0], [0], [1], [0, 0, 1, 1], [], []>} : vector<8x128xbf16>, vector<128x128xbf16>, vector<8x128xf32> -> vector<8x128xf32>
    %cst_63 = arith.constant 0.000000e+00 : f32
    %174 = vector.broadcast %cst_63 : f32 to vector<8x128xf32>
    %175 = arith.maximumf %173, %174 : vector<8x128xf32>
    %176 = math.absf %173 : vector<8x128xf32>
    %cst_64 = arith.constant 0.000000e+00 : f32
    %177 = vector.broadcast %cst_64 : f32 to vector<8x128xf32>
    %178 = arith.subf %177, %176 : vector<8x128xf32>
    %179 = math.exp %178 : vector<8x128xf32>
    %180 = math.log1p %179 : vector<8x128xf32>
    %181 = arith.addf %175, %180 : vector<8x128xf32>
    %182 = arith.subf %168, %181 : vector<8x128xf32>
    %c13_i32 = arith.constant 13 : i32
    %183 = arith.truncf %182 : vector<8x128xf32> to vector<8x128xbf16>
    %184 = arith.index_cast %c13_i32 : i32 to index
    %c0_65 = arith.constant 0 : index
    %c0_66 = arith.constant 0 : index
    %185 = vector.load %arg2[%184, %c0_65, %c0_66] : memref<16x128x128xbf16, #tpu.memory_space<vmem>>, vector<1x128x128xbf16>
    %186 = vector.shape_cast %185 : vector<1x128x128xbf16> to vector<128x128xbf16>
    %cst_67 = arith.constant dense<0.000000e+00> : vector<8x128xf32>
    %187 = tpu.matmul %183, %186, %cst_67 {dimension_numbers = #tpu.dot_dimension_numbers<[1], [0], [0], [1], [0, 0, 1, 1], [], []>} : vector<8x128xbf16>, vector<128x128xbf16>, vector<8x128xf32> -> vector<8x128xf32>
    %cst_68 = arith.constant 0.000000e+00 : f32
    %188 = vector.broadcast %cst_68 : f32 to vector<8x128xf32>
    %189 = arith.maximumf %187, %188 : vector<8x128xf32>
    %190 = math.absf %187 : vector<8x128xf32>
    %cst_69 = arith.constant 0.000000e+00 : f32
    %191 = vector.broadcast %cst_69 : f32 to vector<8x128xf32>
    %192 = arith.subf %191, %190 : vector<8x128xf32>
    %193 = math.exp %192 : vector<8x128xf32>
    %194 = math.log1p %193 : vector<8x128xf32>
    %195 = arith.addf %189, %194 : vector<8x128xf32>
    %196 = arith.subf %182, %195 : vector<8x128xf32>
    %c14_i32 = arith.constant 14 : i32
    %197 = arith.truncf %196 : vector<8x128xf32> to vector<8x128xbf16>
    %198 = arith.index_cast %c14_i32 : i32 to index
    %c0_70 = arith.constant 0 : index
    %c0_71 = arith.constant 0 : index
    %199 = vector.load %arg2[%198, %c0_70, %c0_71] : memref<16x128x128xbf16, #tpu.memory_space<vmem>>, vector<1x128x128xbf16>
    %200 = vector.shape_cast %199 : vector<1x128x128xbf16> to vector<128x128xbf16>
    %cst_72 = arith.constant dense<0.000000e+00> : vector<8x128xf32>
    %201 = tpu.matmul %197, %200, %cst_72 {dimension_numbers = #tpu.dot_dimension_numbers<[1], [0], [0], [1], [0, 0, 1, 1], [], []>} : vector<8x128xbf16>, vector<128x128xbf16>, vector<8x128xf32> -> vector<8x128xf32>
    %cst_73 = arith.constant 0.000000e+00 : f32
    %202 = vector.broadcast %cst_73 : f32 to vector<8x128xf32>
    %203 = arith.maximumf %201, %202 : vector<8x128xf32>
    %204 = math.absf %201 : vector<8x128xf32>
    %cst_74 = arith.constant 0.000000e+00 : f32
    %205 = vector.broadcast %cst_74 : f32 to vector<8x128xf32>
    %206 = arith.subf %205, %204 : vector<8x128xf32>
    %207 = math.exp %206 : vector<8x128xf32>
    %208 = math.log1p %207 : vector<8x128xf32>
    %209 = arith.addf %203, %208 : vector<8x128xf32>
    %210 = arith.subf %196, %209 : vector<8x128xf32>
    %c15_i32 = arith.constant 15 : i32
    %211 = arith.truncf %210 : vector<8x128xf32> to vector<8x128xbf16>
    %212 = arith.index_cast %c15_i32 : i32 to index
    %c0_75 = arith.constant 0 : index
    %c0_76 = arith.constant 0 : index
    %213 = vector.load %arg2[%212, %c0_75, %c0_76] : memref<16x128x128xbf16, #tpu.memory_space<vmem>>, vector<1x128x128xbf16>
    %214 = vector.shape_cast %213 : vector<1x128x128xbf16> to vector<128x128xbf16>
    %cst_77 = arith.constant dense<0.000000e+00> : vector<8x128xf32>
    %215 = tpu.matmul %211, %214, %cst_77 {dimension_numbers = #tpu.dot_dimension_numbers<[1], [0], [0], [1], [0, 0, 1, 1], [], []>} : vector<8x128xbf16>, vector<128x128xbf16>, vector<8x128xf32> -> vector<8x128xf32>
    %cst_78 = arith.constant 0.000000e+00 : f32
    %216 = vector.broadcast %cst_78 : f32 to vector<8x128xf32>
    %217 = arith.maximumf %215, %216 : vector<8x128xf32>
    %218 = math.absf %215 : vector<8x128xf32>
    %cst_79 = arith.constant 0.000000e+00 : f32
    %219 = vector.broadcast %cst_79 : f32 to vector<8x128xf32>
    %220 = arith.subf %219, %218 : vector<8x128xf32>
    %221 = math.exp %220 : vector<8x128xf32>
    %222 = math.log1p %221 : vector<8x128xf32>
    %223 = arith.addf %217, %222 : vector<8x128xf32>
    %224 = arith.subf %210, %223 : vector<8x128xf32>
    %c16_i32 = arith.constant 16 : i32
    %c0_80 = arith.constant 0 : index
    %c0_81 = arith.constant 0 : index
    %225 = vector.load %arg3[%c0_80, %c0_81] : memref<8x128xf32, #tpu.memory_space<vmem>>, vector<8x128xf32>
    tpu.vector_store %arg3[%c0_80, %c0_81], %224 {strides = array<i32>} : memref<8x128xf32, #tpu.memory_space<vmem>>, vector<8x128xf32>,
    return
  }
  func.func @transform_0(%arg0: i32) -> (i32, i32) {
    %c0_i32 = arith.constant 0 : i32
    %c0_i32_0 = arith.constant 0 : i32
    return %arg0, %c0_i32 : i32, i32
  }
  func.func @transform_1(%arg0: i32) -> (i32, i32, i32) {
    %c0_i32 = arith.constant 0 : i32
    %c0_i32_0 = arith.constant 0 : i32
    %c0_i32_1 = arith.constant 0 : i32
    %c0_i32_2 = arith.constant 0 : i32
    return %c0_i32, %c0_i32_0, %c0_i32_1 : i32, i32, i32
  }
  func.func @transform_2(%arg0: i32) -> (i32, i32) {
    %c0_i32 = arith.constant 0 : i32
    %c0_i32_0 = arith.constant 0 : i32
    return %arg0, %c0_i32 : i32, i32
  }
}

</mosaic_0001>

<bundles_post_ra>
// kernel: resnet_forward.1
= control target key start
LH: loop header
LB: loop body
LE: loop exit
PB: predicated region body
PF: predicated region fallthrough
CT: control target
= control target key end

     0   :  { %7 = vsyncpa [#allocation3], 0  ;;  %s3041_s0 = inlined_call_operand.vmem [shape: f32[8,128], index: 0, kind: input, shape index: {}]   ;;  %s3042_s1 = inlined_call_operand.hbm [shape: bf16[16,128,128], index: 1, kind: input, shape index: {}]   ;;  %s3043_s2 = inlined_call_operand.hbm [shape: f32[8,128], index: 2, kind: output, shape index: {}]  }
   0x1   :  { %8 = vsyncpa [#allocation4], 0  ;;  %s2833_s9 = smov [#allocation2]   ;;  %s2785_s13 = scalar_lea.hbm %s3042_s1, 16384 }
   0x2   :  { %s16_s10 = sshll.u32 %s2833_s9, 4  ;;  %p2786_p0 = scmp.ne.s32.totalorder %s3042_s1, %s2785_s13  ;;  %s17_s10 = int_to_ptr.vmem [resolvable:$true] %s16_s10 }
   0x3   :  { %p2789_p1 = scmp.lt.u32.totalorder %s2785_s13, %s3042_s1 }
   0x5   :  { %p2791_p2 = pnand %p2789_p1, %p2786_p0 }
   0x7   :  { %2794 = shalt.err (!%p2791_p2)
}
   0x8   :  { %s2795_s18 = scalar_lea.vmem %s17_s10, 16384  ;;  %p2800_p4 = scmp.lt.s32.totalorder %s17_s10, %s17_s10 }
   0x9   :  { %p2796_p3 = scmp.ne.s32.totalorder %s17_s10, %s2795_s18  ;;  %p2801_p5 = scmp.lt.s32.totalorder %s2795_s18, %s2795_s18 }
   0xb   :  { %p2802_p6 = por %p2801_p5, %p2800_p4 }
   0xd   :  { %p2803_p7 = pnand %p2802_p6, %p2796_p3 }
   0xf   :  { %2806 = shalt.err (!%p2803_p7)
}
  0x10   :  { %s2834_s19 = smov 64   ;;  %s2835_s20 = smov 4  }
  0x11   :  { %22 = dma.hbm_to_vmem [thread:$0]  %s3042_s1, 16384, %s17_s10, [#allocation3], %s2834_s19, %s2834_s19, %s2835_s20  }
  0x12   :  { %2829 = dma.done.wait [#allocation3], 16384  }
  0x13   :  { %2830 = vsyncadd [#allocation3], 4294950912  ;;  %v2836_v0 = vmov 0.0   ;;  %vm2837_vm0 = vmmov 0   ;;  %v2593_v1 = vld [vmem:[#allocation2] sm:$0xff]   ;;  %v2594_v2 = vld [vmem:[#allocation2 + $0x8] sm:$0xff]  }
  0x14   :  { %2267 = vmatprep.subr.bf16.mxu0 %v2836_v0  ;;  %2283 = vmatprep.mubr.msk.bf16.mxu0 %vm2837_vm0, %v2836_v0  ;;  %v2595_v3 = vld [vmem:[#allocation2 + $0x10] sm:$0xff]   ;;  %v2596_v4 = vld [vmem:[#allocation2 + $0x18] sm:$0xff]   ;;  %v2597_v5 = vld [vmem:[#allocation2 + $0x20] sm:$0xff]  }
  0x15   :  { %2287 = vmatprep.subr.bf16.mxu1 %v2836_v0  ;;  %2303 = vmatprep.mubr.msk.bf16.mxu1 %vm2837_vm0, %v2836_v0  ;;  %v2598_v6 = vld [vmem:[#allocation2 + $0x28] sm:$0xff]   ;;  %v2599_v7 = vld [vmem:[#allocation2 + $0x30] sm:$0xff]   ;;  %v2600_v8 = vld [vmem:[#allocation2 + $0x38] sm:$0xff]  }
  0x16   :  { %2268 = vmatpush3.bf16.msra.mxu0 %v2593_v1  ;;  %v27_v9 = vld [vmem:[%s3041_s0] sm:$0xff]  ;;  %v2602_v12 = vld [vmem:[#allocation2 + $0x48] sm:$0xff]   ;;  %v2603_v13 = vld [vmem:[#allocation2 + $0x50] sm:$0xff]   ;;  %s2838_s0 = smov [#allocation5]  }
  0x17   :  { %2269 = vmatprep.subr.bf16.mxu0 %v2836_v0  ;;  %v28_v10 = vpack.c.bf16 %v27_v9, %v27_v9  ;;  %v2601_v11 = vld [vmem:[#allocation2 + $0x40] sm:$0xff]   ;;  %v2604_v14 = vld [vmem:[#allocation2 + $0x58] sm:$0xff]   ;;  %v2606_v16 = vld [vmem:[#allocation2 + $0x68] sm:$0xff]   ;;  %s1986_s24 = sshll.u32 %s2838_s0, 4  ;;  %s1987_s24 = int_to_ptr.vmem [resolvable:$true] %s1986_s24 }
  0x18   :  { %2288 = vmatpush3.bf16.msra.mxu1 %v2601_v11  ;;  %v2605_v15 = vld [vmem:[#allocation2 + $0x60] sm:$0xff]   ;;  %v2607_v17 = vld [vmem:[#allocation2 + $0x70] sm:$0xff]   ;;  %v2608_v18 = vld [vmem:[#allocation2 + $0x78] sm:$0xff]   ;;  %s2807_s25 = scalar_lea.vmem %s1987_s24, 128  ;;  %p2812_p9 = scmp.lt.s32.totalorder %s1987_s24, %s1987_s24 }
  0x19   :  { %2289 = vmatprep.subr.bf16.mxu1 %v2836_v0  ;;  %v2609_v39 = vld [vmem:[#allocation2 + $0x80] sm:$0xff]   ;;  %v2610_v40 = vld [vmem:[#allocation2 + $0x88] sm:$0xff]   ;;  %v2611_v41 = vld [vmem:[#allocation2 + $0x90] sm:$0xff]   ;;  %p2808_p8 = scmp.ne.s32.totalorder %s1987_s24, %s2807_s25  ;;  %p2813_p10 = scmp.lt.s32.totalorder %s2807_s25, %s2807_s25 }
  0x1a   :  { %2270 = vmatpush3.bf16.msra.mxu0 %v2594_v2  ;;  %v2612_v42 = vld [vmem:[#allocation2 + $0x98] sm:$0xff]   ;;  %v2613_v43 = vld [vmem:[#allocation2 + $0xa0] sm:$0xff]   ;;  %v2614_v44 = vld [vmem:[#allocation2 + $0xa8] sm:$0xff]  }
  0x1b   :  { %2271 = vmatprep.subr.bf16.mxu0 %v2836_v0  ;;  %v2615_v45 = vld [vmem:[#allocation2 + $0xb0] sm:$0xff]   ;;  %v2616_v46 = vld [vmem:[#allocation2 + $0xb8] sm:$0xff]   ;;  %p2814_p11 = por %p2813_p10, %p2812_p9 }
  0x1c   :  { %2290 = vmatpush3.bf16.msra.mxu1 %v2602_v12  ;;  %v2624_v11 = vld [vmem:[#allocation2 + $0xf8] sm:$0xff]  }
  0x1d   :  { %2291 = vmatprep.subr.bf16.mxu1 %v2836_v0  ;;  %p2815_p12 = pnand %p2814_p11, %p2808_p8 }
  0x1e   :  { %2272 = vmatpush3.bf16.msra.mxu0 %v2595_v3 }
  0x1f   :  { %2273 = vmatprep.subr.bf16.mxu0 %v2836_v0 }
  0x20   :  { %2292 = vmatpush3.bf16.msra.mxu1 %v2603_v13 }
  0x21   :  { %2293 = vmatprep.subr.bf16.mxu1 %v2836_v0 }
  0x22   :  { %2274 = vmatpush3.bf16.msra.mxu0 %v2596_v4  ;;  %v2617_v4 = vld [vmem:[#allocation2 + $0xc0] sm:$0xff]  }
  0x23   :  { %2275 = vmatprep.subr.bf16.mxu0 %v2836_v0 }
  0x24   :  { %2294 = vmatpush3.bf16.msra.mxu1 %v2604_v14 }
  0x25   :  { %2295 = vmatprep.subr.bf16.mxu1 %v2836_v0 }
  0x26   :  { %2276 = vmatpush3.bf16.msra.mxu0 %v2597_v5  ;;  %v2618_v5 = vld [vmem:[#allocation2 + $0xc8] sm:$0xff]  }
  0x27   :  { %2277 = vmatprep.subr.bf16.mxu0 %v2836_v0 }
  0x28   :  { %2296 = vmatpush3.bf16.msra.mxu1 %v2605_v15 }
  0x29   :  { %2297 = vmatprep.subr.bf16.mxu1 %v2836_v0 }
  0x2a   :  { %2278 = vmatpush3.bf16.msra.mxu0 %v2598_v6  ;;  %v2619_v6 = vld [vmem:[#allocation2 + $0xd0] sm:$0xff]  }
  0x2b   :  { %2279 = vmatprep.subr.bf16.mxu0 %v2836_v0 }
  0x2c   :  { %2298 = vmatpush3.bf16.msra.mxu1 %v2606_v16 }
  0x2d   :  { %2299 = vmatprep.subr.bf16.mxu1 %v2836_v0 }
  0x2e   :  { %2280 = vmatpush3.bf16.msra.mxu0 %v2599_v7  ;;  %v2620_v7 = vld [vmem:[#allocation2 + $0xd8] sm:$0xff]  }
  0x2f   :  { %2281 = vmatprep.subr.bf16.mxu0 %v2836_v0 }
  0x30   :  { %2300 = vmatpush3.bf16.msra.mxu1 %v2607_v17 }
  0x31   :  { %2301 = vmatprep.subr.bf16.mxu1 %v2836_v0 }
  0x32   :  { %2282 = vmatpush3.bf16.msra.mxu0 %v2600_v8  ;;  %v2621_v8 = vld [vmem:[#allocation2 + $0xe0] sm:$0xff]  }
  0x33   :  { %2307 = vmatprep.subr.bf16.mxu0 %v2836_v0 }
  0x34   :  { %2302 = vmatpush3.bf16.msra.mxu1 %v2608_v18 }
  0x35   :  { %2284 = vmatmul.mubr.bf16.vlgmr.msra.gmra.mrb[0].mxu0 %v28_v10  ;;  %2327 = vmatprep.subr.bf16.mxu1 %v2836_v0  ;;  %v2623_v10 = vld [vmem:[#allocation2 + $0xf0] sm:$0xff]  }
  0x36   :  { %2323 = vmatprep.mubr.msk.bf16.mxu0 %vm2837_vm0, %v2836_v0  ;;  %2308 = vmatpush3.bf16.msra.mxu0 %v2609_v39  ;;  %v2632_v39 = vld [vmem:[#allocation2 + $0x138] sm:$0xff]  }
  0x37   :  { %2309 = vmatprep.subr.bf16.mxu0 %v2836_v0 }
  0x3a   :  { %2310 = vmatpush3.bf16.msra.mxu0 %v2610_v40 }
  0x3b   :  { %2311 = vmatprep.subr.bf16.mxu0 %v2836_v0 }
  0x3e   :  { %2312 = vmatpush3.bf16.msra.mxu0 %v2611_v41 }
  0x3f   :  { %2313 = vmatprep.subr.bf16.mxu0 %v2836_v0 }
  0x42   :  { %2314 = vmatpush3.bf16.msra.mxu0 %v2612_v42 }
  0x43   :  { %2315 = vmatprep.subr.bf16.mxu0 %v2836_v0 }
  0x46   :  { %2316 = vmatpush3.bf16.msra.mxu0 %v2613_v43 }
  0x47   :  { %2317 = vmatprep.subr.bf16.mxu0 %v2836_v0 }
  0x4a   :  { %2318 = vmatpush3.bf16.msra.mxu0 %v2614_v44 }
  0x4b   :  { %2319 = vmatprep.subr.bf16.mxu0 %v2836_v0 }
  0x4e   :  { %2320 = vmatpush3.bf16.msra.mxu0 %v2615_v45 }
  0x4f   :  { %2321 = vmatprep.subr.bf16.mxu0 %v2836_v0 }
  0x52   :  { %2322 = vmatpush3.bf16.msra.mxu0 %v2616_v46 }
  0x53   :  { %2347 = vmatprep.subr.bf16.mxu0 %v2836_v0 }
 0x108   :  { %v127_v19 = vpop.f32.mrb[0].mxu0 }
 0x109   :  { %v134_v20 = vand.u32 2147483647, %v127_v19  ;;  %v2285_v21 = vpop.f32.mrb[1].mxu0  ;;  %v133_v34 = vmax.f32 %v127_v19, 0.0 }
 0x10a   :  { %v130_v22 = vpop.f32.mrb[2].mxu0 }
 0x10b   :  { %v135_v23 = vsub.f32 0.0, %v134_v20  ;;  %v2286_v24 = vpop.f32.mrb[3].mxu0 }
 0x10d   :  { %v136_v25 = vmul.f32 1.442695, %v135_v23 }
 0x10f   :  { %2721 = vpow2.f32 %v136_v25 }
 0x119   :  { %v2722_v26 = vpop.eup %2721 }
 0x11a   :  { %v138_v27 = vadd.f32 1.0, %v2722_v26  ;;  %v141_v28 = vmul.f32 -0.5, %v2722_v26  ;;  %v144_v30 = vand.u32 2147483647, %v2722_v26 }
 0x11c   :  { %2723 = vlog2.f32 %v138_v27  ;;  %v142_v29 = vadd.f32 1.0, %v141_v28  ;;  %vm145_vm1 = vcmp.lt.f32.partialorder %v144_v30, 0.0004427343 }
 0x11e   :  { %v143_v33 = vmul.f32 %v2722_v26, %v142_v29 }
 0x126   :  { %v2724_v31 = vpop.eup %2723 }
 0x127   :  { %v140_v32 = vmul.f32 0.6931472, %v2724_v31 }
 0x129   :  { %v146_v35 = vsel %vm145_vm1, %v143_v33, %v140_v32  ;;  %v2625_v32 = vld [vmem:[#allocation2 + $0x100] sm:$0xff]   ;;  %v2626_v33 = vld [vmem:[#allocation2 + $0x108] sm:$0xff]  }
 0x12a   :  { %v147_v36 = vadd.f32 %v146_v35, %v133_v34  ;;  %v2627_v34 = vld [vmem:[#allocation2 + $0x110] sm:$0xff]   ;;  %v2628_v35 = vld [vmem:[#allocation2 + $0x118] sm:$0xff]  }
 0x12c   :  { %v148_v37 = vsub.f32 %v27_v9, %v147_v36  ;;  %v2622_v9 = vld [vmem:[#allocation2 + $0xe8] sm:$0xff]   ;;  %v2629_v36 = vld [vmem:[#allocation2 + $0x120] sm:$0xff]  }
 0x12e   :  { %v149_v38 = vpack.c.bf16 %v148_v37, %v148_v37 }
 0x130   :  { %2304 = vmatmul.mubr.bf16.vlgmr.msra.gmra.mrb[0].mxu1 %v149_v38  ;;  %v2631_v38 = vld [vmem:[#allocation2 + $0x130] sm:$0xff]  }
 0x131   :  { %2343 = vmatprep.mubr.msk.bf16.mxu1 %vm2837_vm0, %v2836_v0  ;;  %2328 = vmatpush3.bf16.msra.mxu1 %v2617_v4  ;;  %v2640_v4 = vld [vmem:[#allocation2 + $0x178] sm:$0xff]  }
 0x132   :  { %2329 = vmatprep.subr.bf16.mxu1 %v2836_v0 }
 0x135   :  { %2330 = vmatpush3.bf16.msra.mxu1 %v2618_v5 }
 0x136   :  { %2331 = vmatprep.subr.bf16.mxu1 %v2836_v0 }
 0x139   :  { %2332 = vmatpush3.bf16.msra.mxu1 %v2619_v6 }
 0x13a   :  { %2333 = vmatprep.subr.bf16.mxu1 %v2836_v0 }
 0x13d   :  { %2334 = vmatpush3.bf16.msra.mxu1 %v2620_v7 }
 0x13e   :  { %2335 = vmatprep.subr.bf16.mxu1 %v2836_v0 }
 0x141   :  { %2336 = vmatpush3.bf16.msra.mxu1 %v2621_v8 }
 0x142   :  { %2337 = vmatprep.subr.bf16.mxu1 %v2836_v0 }
 0x145   :  { %2338 = vmatpush3.bf16.msra.mxu1 %v2622_v9 }
 0x146   :  { %2339 = vmatprep.subr.bf16.mxu1 %v2836_v0 }
 0x149   :  { %2340 = vmatpush3.bf16.msra.mxu1 %v2623_v10 }
 0x14a   :  { %2341 = vmatprep.subr.bf16.mxu1 %v2836_v0 }
 0x14d   :  { %2342 = vmatpush3.bf16.msra.mxu1 %v2624_v11 }
 0x14e   :  { %2367 = vmatprep.subr.bf16.mxu1 %v2836_v0 }
 0x203   :  { %v249_v47 = vpop.f32.mrb[0].mxu1 }
 0x204   :  { %v256_v48 = vand.u32 2147483647, %v249_v47  ;;  %v2305_v49 = vpop.f32.mrb[1].mxu1  ;;  %v255_v62 = vmax.f32 %v249_v47, 0.0 }
 0x205   :  { %v252_v50 = vpop.f32.mrb[2].mxu1 }
 0x206   :  { %v257_v51 = vsub.f32 0.0, %v256_v48  ;;  %v2306_v52 = vpop.f32.mrb[3].mxu1 }
 0x208   :  { %v258_v53 = vmul.f32 1.442695, %v257_v51 }
 0x20a   :  { %2725 = vpow2.f32 %v258_v53 }
 0x214   :  { %v2726_v54 = vpop.eup %2725 }
 0x215   :  { %v260_v55 = vadd.f32 1.0, %v2726_v54  ;;  %v263_v56 = vmul.f32 -0.5, %v2726_v54  ;;  %v266_v58 = vand.u32 2147483647, %v2726_v54 }
 0x217   :  { %2727 = vlog2.f32 %v260_v55  ;;  %v264_v57 = vadd.f32 1.0, %v263_v56  ;;  %vm267_vm2 = vcmp.lt.f32.partialorder %v266_v58, 0.0004427343 }
 0x219   :  { %v265_v61 = vmul.f32 %v2726_v54, %v264_v57 }
 0x221   :  { %v2728_v59 = vpop.eup %2727 }
 0x222   :  { %v262_v60 = vmul.f32 0.6931472, %v2728_v59 }
 0x224   :  { %v268_v63 = vsel %vm267_vm2, %v265_v61, %v262_v60  ;;  %v2633_v60 = vld [vmem:[#allocation2 + $0x140] sm:$0xff]   ;;  %v2634_v61 = vld [vmem:[#allocation2 + $0x148] sm:$0xff]  }
 0x225   :  { %v269_v1 = vadd.f32 %v268_v63, %v255_v62  ;;  %v2635_v62 = vld [vmem:[#allocation2 + $0x150] sm:$0xff]   ;;  %v2636_v63 = vld [vmem:[#allocation2 + $0x158] sm:$0xff]  }
 0x227   :  { %v270_v2 = vsub.f32 %v148_v37, %v269_v1  ;;  %v2630_v37 = vld [vmem:[#allocation2 + $0x128] sm:$0xff]   ;;  %v2637_v1 = vld [vmem:[#allocation2 + $0x160] sm:$0xff]  }
 0x229   :  { %v271_v3 = vpack.c.bf16 %v270_v2, %v270_v2 }
 0x22b   :  { %2324 = vmatmul.mubr.bf16.vlgmr.msra.gmra.mrb[4].mxu0 %v271_v3  ;;  %v2639_v3 = vld [vmem:[#allocation2 + $0x170] sm:$0xff]  }
 0x22c   :  { %2363 = vmatprep.mubr.msk.bf16.mxu0 %vm2837_vm0, %v2836_v0  ;;  %2348 = vmatpush3.bf16.msra.mxu0 %v2625_v32  ;;  %v2648_v32 = vld [vmem:[#allocation2 + $0x1b8] sm:$0xff]  }
 0x22d   :  { %2349 = vmatprep.subr.bf16.mxu0 %v2836_v0 }
 0x230   :  { %2350 = vmatpush3.bf16.msra.mxu0 %v2626_v33 }
 0x231   :  { %2351 = vmatprep.subr.bf16.mxu0 %v2836_v0 }
 0x234   :  { %2352 = vmatpush3.bf16.msra.mxu0 %v2627_v34 }
 0x235   :  { %2353 = vmatprep.subr.bf16.mxu0 %v2836_v0 }
 0x238   :  { %2354 = vmatpush3.bf16.msra.mxu0 %v2628_v35 }
 0x239   :  { %2355 = vmatprep.subr.bf16.mxu0 %v2836_v0 }
 0x23c   :  { %2356 = vmatpush3.bf16.msra.mxu0 %v2629_v36 }
 0x23d   :  { %2357 = vmatprep.subr.bf16.mxu0 %v2836_v0 }
 0x240   :  { %2358 = vmatpush3.bf16.msra.mxu0 %v2630_v37 }
 0x241   :  { %2359 = vmatprep.subr.bf16.mxu0 %v2836_v0 }
 0x244   :  { %2360 = vmatpush3.bf16.msra.mxu0 %v2631_v38 }
 0x245   :  { %2361 = vmatprep.subr.bf16.mxu0 %v2836_v0 }
 0x248   :  { %2362 = vmatpush3.bf16.msra.mxu0 %v2632_v39 }
 0x249   :  { %2387 = vmatprep.subr.bf16.mxu0 %v2836_v0 }
 0x2fe   :  { %v371_v12 = vpop.f32.mrb[4].mxu0 }
 0x2ff   :  { %v378_v13 = vand.u32 2147483647, %v371_v12  ;;  %v2325_v14 = vpop.f32.mrb[5].mxu0  ;;  %v377_v27 = vmax.f32 %v371_v12, 0.0 }
 0x300   :  { %v374_v15 = vpop.f32.mrb[6].mxu0 }
 0x301   :  { %v379_v16 = vsub.f32 0.0, %v378_v13  ;;  %v2326_v17 = vpop.f32.mrb[7].mxu0 }
 0x303   :  { %v380_v18 = vmul.f32 1.442695, %v379_v16 }
 0x305   :  { %2729 = vpow2.f32 %v380_v18 }
 0x30f   :  { %v2730_v19 = vpop.eup %2729 }
 0x310   :  { %v382_v20 = vadd.f32 1.0, %v2730_v19  ;;  %v385_v21 = vmul.f32 -0.5, %v2730_v19  ;;  %v388_v23 = vand.u32 2147483647, %v2730_v19 }
 0x312   :  { %2731 = vlog2.f32 %v382_v20  ;;  %v386_v22 = vadd.f32 1.0, %v385_v21  ;;  %vm389_vm3 = vcmp.lt.f32.partialorder %v388_v23, 0.0004427343 }
 0x314   :  { %v387_v26 = vmul.f32 %v2730_v19, %v386_v22 }
 0x31c   :  { %v2732_v24 = vpop.eup %2731 }
 0x31d   :  { %v384_v25 = vmul.f32 0.6931472, %v2732_v24 }
 0x31f   :  { %v390_v28 = vsel %vm389_vm3, %v387_v26, %v384_v25  ;;  %v2641_v25 = vld [vmem:[#allocation2 + $0x180] sm:$0xff]   ;;  %v2642_v26 = vld [vmem:[#allocation2 + $0x188] sm:$0xff]  }
 0x320   :  { %v391_v29 = vadd.f32 %v390_v28, %v377_v27  ;;  %v2643_v27 = vld [vmem:[#allocation2 + $0x190] sm:$0xff]   ;;  %v2644_v28 = vld [vmem:[#allocation2 + $0x198] sm:$0xff]  }
 0x322   :  { %v392_v30 = vsub.f32 %v270_v2, %v391_v29  ;;  %v2638_v2 = vld [vmem:[#allocation2 + $0x168] sm:$0xff]   ;;  %v2645_v29 = vld [vmem:[#allocation2 + $0x1a0] sm:$0xff]  }
 0x324   :  { %v393_v31 = vpack.c.bf16 %v392_v30, %v392_v30 }
 0x326   :  { %2344 = vmatmul.mubr.bf16.vlgmr.msra.gmra.mrb[4].mxu1 %v393_v31  ;;  %v2647_v31 = vld [vmem:[#allocation2 + $0x1b0] sm:$0xff]  }
 0x327   :  { %2383 = vmatprep.mubr.msk.bf16.mxu1 %vm2837_vm0, %v2836_v0  ;;  %2368 = vmatpush3.bf16.msra.mxu1 %v2633_v60  ;;  %v2656_v60 = vld [vmem:[#allocation2 + $0x1f8] sm:$0xff]  }
 0x328   :  { %2369 = vmatprep.subr.bf16.mxu1 %v2836_v0 }
 0x32b   :  { %2370 = vmatpush3.bf16.msra.mxu1 %v2634_v61 }
 0x32c   :  { %2371 = vmatprep.subr.bf16.mxu1 %v2836_v0 }
 0x32f   :  { %2372 = vmatpush3.bf16.msra.mxu1 %v2635_v62 }
 0x330   :  { %2373 = vmatprep.subr.bf16.mxu1 %v2836_v0 }
 0x333   :  { %2374 = vmatpush3.bf16.msra.mxu1 %v2636_v63 }
 0x334   :  { %2375 = vmatprep.subr.bf16.mxu1 %v2836_v0 }
 0x337   :  { %2376 = vmatpush3.bf16.msra.mxu1 %v2637_v1 }
 0x338   :  { %2377 = vmatprep.subr.bf16.mxu1 %v2836_v0 }
 0x33b   :  { %2378 = vmatpush3.bf16.msra.mxu1 %v2638_v2 }
 0x33c   :  { %2379 = vmatprep.subr.bf16.mxu1 %v2836_v0 }
 0x33f   :  { %2380 = vmatpush3.bf16.msra.mxu1 %v2639_v3 }
 0x340   :  { %2381 = vmatprep.subr.bf16.mxu1 %v2836_v0 }
 0x343   :  { %2382 = vmatpush3.bf16.msra.mxu1 %v2640_v4 }
 0x344   :  { %2407 = vmatprep.subr.bf16.mxu1 %v2836_v0 }
 0x3f9   :  { %v493_v40 = vpop.f32.mrb[4].mxu1 }
 0x3fa   :  { %v500_v41 = vand.u32 2147483647, %v493_v40  ;;  %v2345_v42 = vpop.f32.mrb[5].mxu1  ;;  %v499_v55 = vmax.f32 %v493_v40, 0.0 }
 0x3fb   :  { %v496_v43 = vpop.f32.mrb[6].mxu1 }
 0x3fc   :  { %v501_v44 = vsub.f32 0.0, %v500_v41  ;;  %v2346_v45 = vpop.f32.mrb[7].mxu1 }
 0x3fe   :  { %v502_v46 = vmul.f32 1.442695, %v501_v44 }
 0x400   :  { %2733 = vpow2.f32 %v502_v46 }
 0x40a   :  { %v2734_v47 = vpop.eup %2733 }
 0x40b   :  { %v504_v48 = vadd.f32 1.0, %v2734_v47  ;;  %v507_v49 = vmul.f32 -0.5, %v2734_v47  ;;  %v510_v51 = vand.u32 2147483647, %v2734_v47 }
 0x40d   :  { %2735 = vlog2.f32 %v504_v48  ;;  %v508_v50 = vadd.f32 1.0, %v507_v49  ;;  %vm511_vm4 = vcmp.lt.f32.partialorder %v510_v51, 0.0004427343 }
 0x40f   :  { %v509_v54 = vmul.f32 %v2734_v47, %v508_v50 }
 0x417   :  { %v2736_v52 = vpop.eup %2735 }
 0x418   :  { %v506_v53 = vmul.f32 0.6931472, %v2736_v52 }
 0x41a   :  { %v512_v56 = vsel %vm511_vm4, %v509_v54, %v506_v53  ;;  %v2649_v53 = vld [vmem:[#allocation2 + $0x1c0] sm:$0xff]   ;;  %v2650_v54 = vld [vmem:[#allocation2 + $0x1c8] sm:$0xff]  }
 0x41b   :  { %v513_v57 = vadd.f32 %v512_v56, %v499_v55  ;;  %v2651_v55 = vld [vmem:[#allocation2 + $0x1d0] sm:$0xff]   ;;  %v2652_v56 = vld [vmem:[#allocation2 + $0x1d8] sm:$0xff]  }
 0x41d   :  { %v514_v58 = vsub.f32 %v392_v30, %v513_v57  ;;  %v2646_v30 = vld [vmem:[#allocation2 + $0x1a8] sm:$0xff]   ;;  %v2653_v57 = vld [vmem:[#allocation2 + $0x1e0] sm:$0xff]  }
 0x41f   :  { %v515_v59 = vpack.c.bf16 %v514_v58, %v514_v58 }
 0x421   :  { %2364 = vmatmul.mubr.bf16.vlgmr.msra.gmra.mrb[8].mxu0 %v515_v59  ;;  %v2655_v59 = vld [vmem:[#allocation2 + $0x1f0] sm:$0xff]  }
 0x422   :  { %2403 = vmatprep.mubr.msk.bf16.mxu0 %vm2837_vm0, %v2836_v0  ;;  %2388 = vmatpush3.bf16.msra.mxu0 %v2641_v25  ;;  %v2664_v25 = vld [vmem:[#allocation2 + $0x238] sm:$0xff]  }
 0x423   :  { %2389 = vmatprep.subr.bf16.mxu0 %v2836_v0 }
 0x426   :  { %2390 = vmatpush3.bf16.msra.mxu0 %v2642_v26 }
 0x427   :  { %2391 = vmatprep.subr.bf16.mxu0 %v2836_v0 }
 0x42a   :  { %2392 = vmatpush3.bf16.msra.mxu0 %v2643_v27 }
 0x42b   :  { %2393 = vmatprep.subr.bf16.mxu0 %v2836_v0 }
 0x42e   :  { %2394 = vmatpush3.bf16.msra.mxu0 %v2644_v28 }
 0x42f   :  { %2395 = vmatprep.subr.bf16.mxu0 %v2836_v0 }
 0x432   :  { %2396 = vmatpush3.bf16.msra.mxu0 %v2645_v29 }
 0x433   :  { %2397 = vmatprep.subr.bf16.mxu0 %v2836_v0 }
 0x436   :  { %2398 = vmatpush3.bf16.msra.mxu0 %v2646_v30 }
 0x437   :  { %2399 = vmatprep.subr.bf16.mxu0 %v2836_v0 }
 0x43a   :  { %2400 = vmatpush3.bf16.msra.mxu0 %v2647_v31 }
 0x43b   :  { %2401 = vmatprep.subr.bf16.mxu0 %v2836_v0 }
 0x43e   :  { %2402 = vmatpush3.bf16.msra.mxu0 %v2648_v32 }
 0x43f   :  { %2427 = vmatprep.subr.bf16.mxu0 %v2836_v0 }
 0x4f4   :  { %v615_v5 = vpop.f32.mrb[8].mxu0 }
 0x4f5   :  { %v622_v6 = vand.u32 2147483647, %v615_v5  ;;  %v2365_v7 = vpop.f32.mrb[9].mxu0  ;;  %v621_v20 = vmax.f32 %v615_v5, 0.0 }
 0x4f6   :  { %v618_v8 = vpop.f32.mrb[10].mxu0 }
 0x4f7   :  { %v623_v9 = vsub.f32 0.0, %v622_v6  ;;  %v2366_v10 = vpop.f32.mrb[11].mxu0 }
 0x4f9   :  { %v624_v11 = vmul.f32 1.442695, %v623_v9 }
 0x4fb   :  { %2737 = vpow2.f32 %v624_v11 }
 0x505   :  { %v2738_v12 = vpop.eup %2737 }
 0x506   :  { %v626_v13 = vadd.f32 1.0, %v2738_v12  ;;  %v629_v14 = vmul.f32 -0.5, %v2738_v12  ;;  %v632_v16 = vand.u32 2147483647, %v2738_v12 }
 0x508   :  { %2739 = vlog2.f32 %v626_v13  ;;  %v630_v15 = vadd.f32 1.0, %v629_v14  ;;  %vm633_vm5 = vcmp.lt.f32.partialorder %v632_v16, 0.0004427343 }
 0x50a   :  { %v631_v19 = vmul.f32 %v2738_v12, %v630_v15 }
 0x512   :  { %v2740_v17 = vpop.eup %2739 }
 0x513   :  { %v628_v18 = vmul.f32 0.6931472, %v2740_v17 }
 0x515   :  { %v634_v21 = vsel %vm633_vm5, %v631_v19, %v628_v18  ;;  %v2657_v18 = vld [vmem:[#allocation2 + $0x200] sm:$0xff]   ;;  %v2658_v19 = vld [vmem:[#allocation2 + $0x208] sm:$0xff]  }
 0x516   :  { %v635_v22 = vadd.f32 %v634_v21, %v621_v20  ;;  %v2659_v20 = vld [vmem:[#allocation2 + $0x210] sm:$0xff]   ;;  %v2660_v21 = vld [vmem:[#allocation2 + $0x218] sm:$0xff]  }
 0x518   :  { %v636_v23 = vsub.f32 %v514_v58, %v635_v22  ;;  %v2654_v58 = vld [vmem:[#allocation2 + $0x1e8] sm:$0xff]   ;;  %v2661_v22 = vld [vmem:[#allocation2 + $0x220] sm:$0xff]  }
 0x51a   :  { %v637_v24 = vpack.c.bf16 %v636_v23, %v636_v23 }
 0x51c   :  { %2384 = vmatmul.mubr.bf16.vlgmr.msra.gmra.mrb[8].mxu1 %v637_v24  ;;  %v2663_v24 = vld [vmem:[#allocation2 + $0x230] sm:$0xff]  }
 0x51d   :  { %2423 = vmatprep.mubr.msk.bf16.mxu1 %vm2837_vm0, %v2836_v0  ;;  %2408 = vmatpush3.bf16.msra.mxu1 %v2649_v53  ;;  %v2672_v53 = vld [vmem:[#allocation2 + $0x278] sm:$0xff]  }
 0x51e   :  { %2409 = vmatprep.subr.bf16.mxu1 %v2836_v0 }
 0x521   :  { %2410 = vmatpush3.bf16.msra.mxu1 %v2650_v54 }
 0x522   :  { %2411 = vmatprep.subr.bf16.mxu1 %v2836_v0 }
 0x525   :  { %2412 = vmatpush3.bf16.msra.mxu1 %v2651_v55 }
 0x526   :  { %2413 = vmatprep.subr.bf16.mxu1 %v2836_v0 }
 0x529   :  { %2414 = vmatpush3.bf16.msra.mxu1 %v2652_v56 }
 0x52a   :  { %2415 = vmatprep.subr.bf16.mxu1 %v2836_v0 }
 0x52d   :  { %2416 = vmatpush3.bf16.msra.mxu1 %v2653_v57 }
 0x52e   :  { %2417 = vmatprep.subr.bf16.mxu1 %v2836_v0 }
 0x531   :  { %2418 = vmatpush3.bf16.msra.mxu1 %v2654_v58 }
 0x532   :  { %2419 = vmatprep.subr.bf16.mxu1 %v2836_v0 }
 0x535   :  { %2420 = vmatpush3.bf16.msra.mxu1 %v2655_v59 }
 0x536   :  { %2421 = vmatprep.subr.bf16.mxu1 %v2836_v0 }
 0x539   :  { %2422 = vmatpush3.bf16.msra.mxu1 %v2656_v60 }
 0x53a   :  { %2447 = vmatprep.subr.bf16.mxu1 %v2836_v0 }
 0x5ef   :  { %v737_v33 = vpop.f32.mrb[8].mxu1 }
 0x5f0   :  { %v744_v34 = vand.u32 2147483647, %v737_v33  ;;  %v2385_v35 = vpop.f32.mrb[9].mxu1  ;;  %v743_v48 = vmax.f32 %v737_v33, 0.0 }
 0x5f1   :  { %v740_v36 = vpop.f32.mrb[10].mxu1 }
 0x5f2   :  { %v745_v37 = vsub.f32 0.0, %v744_v34  ;;  %v2386_v38 = vpop.f32.mrb[11].mxu1 }
 0x5f4   :  { %v746_v39 = vmul.f32 1.442695, %v745_v37 }
 0x5f6   :  { %2741 = vpow2.f32 %v746_v39 }
 0x600   :  { %v2742_v40 = vpop.eup %2741 }
 0x601   :  { %v748_v41 = vadd.f32 1.0, %v2742_v40  ;;  %v751_v42 = vmul.f32 -0.5, %v2742_v40  ;;  %v754_v44 = vand.u32 2147483647, %v2742_v40 }
 0x603   :  { %2743 = vlog2.f32 %v748_v41  ;;  %v752_v43 = vadd.f32 1.0, %v751_v42  ;;  %vm755_vm6 = vcmp.lt.f32.partialorder %v754_v44, 0.0004427343 }
 0x605   :  { %v753_v47 = vmul.f32 %v2742_v40, %v752_v43 }
 0x60d   :  { %v2744_v45 = vpop.eup %2743 }
 0x60e   :  { %v750_v46 = vmul.f32 0.6931472, %v2744_v45 }
 0x610   :  { %v756_v49 = vsel %vm755_vm6, %v753_v47, %v750_v46  ;;  %v2665_v46 = vld [vmem:[#allocation2 + $0x240] sm:$0xff]   ;;  %v2666_v47 = vld [vmem:[#allocation2 + $0x248] sm:$0xff]  }
 0x611   :  { %v757_v50 = vadd.f32 %v756_v49, %v743_v48  ;;  %v2667_v48 = vld [vmem:[#allocation2 + $0x250] sm:$0xff]   ;;  %v2668_v49 = vld [vmem:[#allocation2 + $0x258] sm:$0xff]  }
 0x613   :  { %v758_v51 = vsub.f32 %v636_v23, %v757_v50  ;;  %v2662_v23 = vld [vmem:[#allocation2 + $0x228] sm:$0xff]   ;;  %v2669_v50 = vld [vmem:[#allocation2 + $0x260] sm:$0xff]  }
 0x615   :  { %v759_v52 = vpack.c.bf16 %v758_v51, %v758_v51 }
 0x617   :  { %2404 = vmatmul.mubr.bf16.vlgmr.msra.gmra.mrb[12].mxu0 %v759_v52  ;;  %v2671_v52 = vld [vmem:[#allocation2 + $0x270] sm:$0xff]  }
 0x618   :  { %2443 = vmatprep.mubr.msk.bf16.mxu0 %vm2837_vm0, %v2836_v0  ;;  %2428 = vmatpush3.bf16.msra.mxu0 %v2657_v18  ;;  %v2680_v18 = vld [vmem:[#allocation2 + $0x2b8] sm:$0xff]  }
 0x619   :  { %2429 = vmatprep.subr.bf16.mxu0 %v2836_v0 }
 0x61c   :  { %2430 = vmatpush3.bf16.msra.mxu0 %v2658_v19 }
 0x61d   :  { %2431 = vmatprep.subr.bf16.mxu0 %v2836_v0 }
 0x620   :  { %2432 = vmatpush3.bf16.msra.mxu0 %v2659_v20 }
 0x621   :  { %2433 = vmatprep.subr.bf16.mxu0 %v2836_v0 }
 0x624   :  { %2434 = vmatpush3.bf16.msra.mxu0 %v2660_v21 }
 0x625   :  { %2435 = vmatprep.subr.bf16.mxu0 %v2836_v0 }
 0x628   :  { %2436 = vmatpush3.bf16.msra.mxu0 %v2661_v22 }
 0x629   :  { %2437 = vmatprep.subr.bf16.mxu0 %v2836_v0 }
 0x62c   :  { %2438 = vmatpush3.bf16.msra.mxu0 %v2662_v23 }
 0x62d   :  { %2439 = vmatprep.subr.bf16.mxu0 %v2836_v0 }
 0x630   :  { %2440 = vmatpush3.bf16.msra.mxu0 %v2663_v24 }
 0x631   :  { %2441 = vmatprep.subr.bf16.mxu0 %v2836_v0 }
 0x634   :  { %2442 = vmatpush3.bf16.msra.mxu0 %v2664_v25 }
 0x635   :  { %2467 = vmatprep.subr.bf16.mxu0 %v2836_v0 }
 0x6ea   :  { %v859_v61 = vpop.f32.mrb[12].mxu0 }
 0x6eb   :  { %v866_v62 = vand.u32 2147483647, %v859_v61  ;;  %v2405_v63 = vpop.f32.mrb[13].mxu0  ;;  %v865_v13 = vmax.f32 %v859_v61, 0.0 }
 0x6ec   :  { %v862_v1 = vpop.f32.mrb[14].mxu0 }
 0x6ed   :  { %v867_v2 = vsub.f32 0.0, %v866_v62  ;;  %v2406_v3 = vpop.f32.mrb[15].mxu0 }
 0x6ef   :  { %v868_v4 = vmul.f32 1.442695, %v867_v2 }
 0x6f1   :  { %2745 = vpow2.f32 %v868_v4 }
 0x6fb   :  { %v2746_v5 = vpop.eup %2745 }
 0x6fc   :  { %v870_v6 = vadd.f32 1.0, %v2746_v5  ;;  %v873_v7 = vmul.f32 -0.5, %v2746_v5  ;;  %v876_v9 = vand.u32 2147483647, %v2746_v5 }
 0x6fe   :  { %2747 = vlog2.f32 %v870_v6  ;;  %v874_v8 = vadd.f32 1.0, %v873_v7  ;;  %vm877_vm7 = vcmp.lt.f32.partialorder %v876_v9, 0.0004427343 }
 0x700   :  { %v875_v12 = vmul.f32 %v2746_v5, %v874_v8 }
 0x708   :  { %v2748_v10 = vpop.eup %2747 }
 0x709   :  { %v872_v11 = vmul.f32 0.6931472, %v2748_v10 }
 0x70b   :  { %v878_v14 = vsel %vm877_vm7, %v875_v12, %v872_v11  ;;  %v2673_v11 = vld [vmem:[#allocation2 + $0x280] sm:$0xff]   ;;  %v2674_v12 = vld [vmem:[#allocation2 + $0x288] sm:$0xff]  }
 0x70c   :  { %v879_v15 = vadd.f32 %v878_v14, %v865_v13  ;;  %v2675_v13 = vld [vmem:[#allocation2 + $0x290] sm:$0xff]   ;;  %v2676_v14 = vld [vmem:[#allocation2 + $0x298] sm:$0xff]  }
 0x70e   :  { %v880_v16 = vsub.f32 %v758_v51, %v879_v15  ;;  %v2670_v51 = vld [vmem:[#allocation2 + $0x268] sm:$0xff]   ;;  %v2677_v15 = vld [vmem:[#allocation2 + $0x2a0] sm:$0xff]  }
 0x710   :  { %v881_v17 = vpack.c.bf16 %v880_v16, %v880_v16 }
 0x712   :  { %2424 = vmatmul.mubr.bf16.vlgmr.msra.gmra.mrb[12].mxu1 %v881_v17  ;;  %v2679_v17 = vld [vmem:[#allocation2 + $0x2b0] sm:$0xff]  }
 0x713   :  { %2463 = vmatprep.mubr.msk.bf16.mxu1 %vm2837_vm0, %v2836_v0  ;;  %2448 = vmatpush3.bf16.msra.mxu1 %v2665_v46  ;;  %v2688_v46 = vld [vmem:[#allocation2 + $0x2f8] sm:$0xff]  }
 0x714   :  { %2449 = vmatprep.subr.bf16.mxu1 %v2836_v0 }
 0x717   :  { %2450 = vmatpush3.bf16.msra.mxu1 %v2666_v47 }
 0x718   :  { %2451 = vmatprep.subr.bf16.mxu1 %v2836_v0 }
 0x71b   :  { %2452 = vmatpush3.bf16.msra.mxu1 %v2667_v48 }
 0x71c   :  { %2453 = vmatprep.subr.bf16.mxu1 %v2836_v0 }
 0x71f   :  { %2454 = vmatpush3.bf16.msra.mxu1 %v2668_v49 }
 0x720   :  { %2455 = vmatprep.subr.bf16.mxu1 %v2836_v0 }
 0x723   :  { %2456 = vmatpush3.bf16.msra.mxu1 %v2669_v50 }
 0x724   :  { %2457 = vmatprep.subr.bf16.mxu1 %v2836_v0 }
 0x727   :  { %2458 = vmatpush3.bf16.msra.mxu1 %v2670_v51 }
 0x728   :  { %2459 = vmatprep.subr.bf16.mxu1 %v2836_v0 }
 0x72b   :  { %2460 = vmatpush3.bf16.msra.mxu1 %v2671_v52 }
 0x72c   :  { %2461 = vmatprep.subr.bf16.mxu1 %v2836_v0 }
 0x72f   :  { %2462 = vmatpush3.bf16.msra.mxu1 %v2672_v53 }
 0x730   :  { %2487 = vmatprep.subr.bf16.mxu1 %v2836_v0 }
 0x7e5   :  { %v981_v26 = vpop.f32.mrb[12].mxu1 }
 0x7e6   :  { %v988_v27 = vand.u32 2147483647, %v981_v26  ;;  %v2425_v28 = vpop.f32.mrb[13].mxu1  ;;  %v987_v41 = vmax.f32 %v981_v26, 0.0 }
 0x7e7   :  { %v984_v29 = vpop.f32.mrb[14].mxu1 }
 0x7e8   :  { %v989_v30 = vsub.f32 0.0, %v988_v27  ;;  %v2426_v31 = vpop.f32.mrb[15].mxu1 }
 0x7ea   :  { %v990_v32 = vmul.f32 1.442695, %v989_v30 }
 0x7ec   :  { %2749 = vpow2.f32 %v990_v32 }
 0x7f6   :  { %v2750_v33 = vpop.eup %2749 }
 0x7f7   :  { %v992_v34 = vadd.f32 1.0, %v2750_v33  ;;  %v995_v35 = vmul.f32 -0.5, %v2750_v33  ;;  %v998_v37 = vand.u32 2147483647, %v2750_v33 }
 0x7f9   :  { %2751 = vlog2.f32 %v992_v34  ;;  %v996_v36 = vadd.f32 1.0, %v995_v35  ;;  %vm999_vm8 = vcmp.lt.f32.partialorder %v998_v37, 0.0004427343 }
 0x7fb   :  { %v997_v40 = vmul.f32 %v2750_v33, %v996_v36 }
 0x803   :  { %v2752_v38 = vpop.eup %2751 }
 0x804   :  { %v994_v39 = vmul.f32 0.6931472, %v2752_v38 }
 0x806   :  { %v1000_v42 = vsel %vm999_vm8, %v997_v40, %v994_v39  ;;  %v2681_v39 = vld [vmem:[#allocation2 + $0x2c0] sm:$0xff]   ;;  %v2682_v40 = vld [vmem:[#allocation2 + $0x2c8] sm:$0xff]  }
 0x807   :  { %v1001_v43 = vadd.f32 %v1000_v42, %v987_v41  ;;  %v2683_v41 = vld [vmem:[#allocation2 + $0x2d0] sm:$0xff]   ;;  %v2684_v42 = vld [vmem:[#allocation2 + $0x2d8] sm:$0xff]  }
 0x809   :  { %v1002_v44 = vsub.f32 %v880_v16, %v1001_v43  ;;  %v2678_v16 = vld [vmem:[#allocation2 + $0x2a8] sm:$0xff]   ;;  %v2685_v43 = vld [vmem:[#allocation2 + $0x2e0] sm:$0xff]  }
 0x80b   :  { %v1003_v45 = vpack.c.bf16 %v1002_v44, %v1002_v44 }
 0x80d   :  { %2444 = vmatmul.mubr.bf16.vlgmr.msra.gmra.mrb[16].mxu0 %v1003_v45  ;;  %v2687_v45 = vld [vmem:[#allocation2 + $0x2f0] sm:$0xff]  }
 0x80e   :  { %2483 = vmatprep.mubr.msk.bf16.mxu0 %vm2837_vm0, %v2836_v0  ;;  %2468 = vmatpush3.bf16.msra.mxu0 %v2673_v11  ;;  %v2696_v11 = vld [vmem:[#allocation2 + $0x338] sm:$0xff]  }
 0x80f   :  { %2469 = vmatprep.subr.bf16.mxu0 %v2836_v0 }
 0x812   :  { %2470 = vmatpush3.bf16.msra.mxu0 %v2674_v12 }
 0x813   :  { %2471 = vmatprep.subr.bf16.mxu0 %v2836_v0 }
 0x816   :  { %2472 = vmatpush3.bf16.msra.mxu0 %v2675_v13 }
 0x817   :  { %2473 = vmatprep.subr.bf16.mxu0 %v2836_v0 }
 0x81a   :  { %2474 = vmatpush3.bf16.msra.mxu0 %v2676_v14 }
 0x81b   :  { %2475 = vmatprep.subr.bf16.mxu0 %v2836_v0 }
 0x81e   :  { %2476 = vmatpush3.bf16.msra.mxu0 %v2677_v15 }
 0x81f   :  { %2477 = vmatprep.subr.bf16.mxu0 %v2836_v0 }
 0x822   :  { %2478 = vmatpush3.bf16.msra.mxu0 %v2678_v16 }
 0x823   :  { %2479 = vmatprep.subr.bf16.mxu0 %v2836_v0 }
 0x826   :  { %2480 = vmatpush3.bf16.msra.mxu0 %v2679_v17 }
 0x827   :  { %2481 = vmatprep.subr.bf16.mxu0 %v2836_v0 }
 0x82a   :  { %2482 = vmatpush3.bf16.msra.mxu0 %v2680_v18 }
 0x82b   :  { %2507 = vmatprep.subr.bf16.mxu0 %v2836_v0 }
 0x8e0   :  { %v1103_v54 = vpop.f32.mrb[16].mxu0 }
 0x8e1   :  { %v1110_v55 = vand.u32 2147483647, %v1103_v54  ;;  %v2445_v56 = vpop.f32.mrb[17].mxu0  ;;  %v1109_v6 = vmax.f32 %v1103_v54, 0.0 }
 0x8e2   :  { %v1106_v57 = vpop.f32.mrb[18].mxu0 }
 0x8e3   :  { %v1111_v58 = vsub.f32 0.0, %v1110_v55  ;;  %v2446_v59 = vpop.f32.mrb[19].mxu0 }
 0x8e5   :  { %v1112_v60 = vmul.f32 1.442695, %v1111_v58 }
 0x8e7   :  { %2753 = vpow2.f32 %v1112_v60 }
 0x8f1   :  { %v2754_v61 = vpop.eup %2753 }
 0x8f2   :  { %v1114_v62 = vadd.f32 1.0, %v2754_v61  ;;  %v1117_v63 = vmul.f32 -0.5, %v2754_v61  ;;  %v1120_v2 = vand.u32 2147483647, %v2754_v61 }
 0x8f4   :  { %2755 = vlog2.f32 %v1114_v62  ;;  %v1118_v1 = vadd.f32 1.0, %v1117_v63  ;;  %vm1121_vm9 = vcmp.lt.f32.partialorder %v1120_v2, 0.0004427343 }
 0x8f6   :  { %v1119_v5 = vmul.f32 %v2754_v61, %v1118_v1 }
 0x8fe   :  { %v2756_v3 = vpop.eup %2755 }
 0x8ff   :  { %v1116_v4 = vmul.f32 0.6931472, %v2756_v3 }
 0x901   :  { %v1122_v7 = vsel %vm1121_vm9, %v1119_v5, %v1116_v4  ;;  %v2689_v4 = vld [vmem:[#allocation2 + $0x300] sm:$0xff]   ;;  %v2690_v5 = vld [vmem:[#allocation2 + $0x308] sm:$0xff]  }
 0x902   :  { %v1123_v8 = vadd.f32 %v1122_v7, %v1109_v6  ;;  %v2691_v6 = vld [vmem:[#allocation2 + $0x310] sm:$0xff]   ;;  %v2692_v7 = vld [vmem:[#allocation2 + $0x318] sm:$0xff]  }
 0x904   :  { %v1124_v9 = vsub.f32 %v1002_v44, %v1123_v8  ;;  %v2686_v44 = vld [vmem:[#allocation2 + $0x2e8] sm:$0xff]   ;;  %v2693_v8 = vld [vmem:[#allocation2 + $0x320] sm:$0xff]  }
 0x906   :  { %v1125_v10 = vpack.c.bf16 %v1124_v9, %v1124_v9 }
 0x908   :  { %2464 = vmatmul.mubr.bf16.vlgmr.msra.gmra.mrb[16].mxu1 %v1125_v10  ;;  %v2695_v10 = vld [vmem:[#allocation2 + $0x330] sm:$0xff]  }
 0x909   :  { %2503 = vmatprep.mubr.msk.bf16.mxu1 %vm2837_vm0, %v2836_v0  ;;  %2488 = vmatpush3.bf16.msra.mxu1 %v2681_v39  ;;  %v2704_v39 = vld [vmem:[#allocation2 + $0x378] sm:$0xff]  }
 0x90a   :  { %2489 = vmatprep.subr.bf16.mxu1 %v2836_v0 }
 0x90d   :  { %2490 = vmatpush3.bf16.msra.mxu1 %v2682_v40 }
 0x90e   :  { %2491 = vmatprep.subr.bf16.mxu1 %v2836_v0 }
 0x911   :  { %2492 = vmatpush3.bf16.msra.mxu1 %v2683_v41 }
 0x912   :  { %2493 = vmatprep.subr.bf16.mxu1 %v2836_v0 }
 0x915   :  { %2494 = vmatpush3.bf16.msra.mxu1 %v2684_v42 }
 0x916   :  { %2495 = vmatprep.subr.bf16.mxu1 %v2836_v0 }
 0x919   :  { %2496 = vmatpush3.bf16.msra.mxu1 %v2685_v43 }
 0x91a   :  { %2497 = vmatprep.subr.bf16.mxu1 %v2836_v0 }
 0x91d   :  { %2498 = vmatpush3.bf16.msra.mxu1 %v2686_v44 }
 0x91e   :  { %2499 = vmatprep.subr.bf16.mxu1 %v2836_v0 }
 0x921   :  { %2500 = vmatpush3.bf16.msra.mxu1 %v2687_v45 }
 0x922   :  { %2501 = vmatprep.subr.bf16.mxu1 %v2836_v0 }
 0x925   :  { %2502 = vmatpush3.bf16.msra.mxu1 %v2688_v46 }
 0x926   :  { %2527 = vmatprep.subr.bf16.mxu1 %v2836_v0 }
 0x9db   :  { %v1225_v19 = vpop.f32.mrb[16].mxu1 }
 0x9dc   :  { %v1232_v20 = vand.u32 2147483647, %v1225_v19  ;;  %v2465_v21 = vpop.f32.mrb[17].mxu1  ;;  %v1231_v34 = vmax.f32 %v1225_v19, 0.0 }
 0x9dd   :  { %v1228_v22 = vpop.f32.mrb[18].mxu1 }
 0x9de   :  { %v1233_v23 = vsub.f32 0.0, %v1232_v20  ;;  %v2466_v24 = vpop.f32.mrb[19].mxu1 }
 0x9e0   :  { %v1234_v25 = vmul.f32 1.442695, %v1233_v23 }
 0x9e2   :  { %2757 = vpow2.f32 %v1234_v25 }
 0x9ec   :  { %v2758_v26 = vpop.eup %2757 }
 0x9ed   :  { %v1236_v27 = vadd.f32 1.0, %v2758_v26  ;;  %v1239_v28 = vmul.f32 -0.5, %v2758_v26  ;;  %v1242_v30 = vand.u32 2147483647, %v2758_v26 }
 0x9ef   :  { %2759 = vlog2.f32 %v1236_v27  ;;  %v1240_v29 = vadd.f32 1.0, %v1239_v28  ;;  %vm1243_vm10 = vcmp.lt.f32.partialorder %v1242_v30, 0.0004427343 }
 0x9f1   :  { %v1241_v33 = vmul.f32 %v2758_v26, %v1240_v29 }
 0x9f9   :  { %v2760_v31 = vpop.eup %2759 }
 0x9fa   :  { %v1238_v32 = vmul.f32 0.6931472, %v2760_v31 }
 0x9fc   :  { %v1244_v35 = vsel %vm1243_vm10, %v1241_v33, %v1238_v32  ;;  %v2697_v32 = vld [vmem:[#allocation2 + $0x340] sm:$0xff]   ;;  %v2698_v33 = vld [vmem:[#allocation2 + $0x348] sm:$0xff]  }
 0x9fd   :  { %v1245_v36 = vadd.f32 %v1244_v35, %v1231_v34  ;;  %v2699_v34 = vld [vmem:[#allocation2 + $0x350] sm:$0xff]   ;;  %v2700_v35 = vld [vmem:[#allocation2 + $0x358] sm:$0xff]  }
 0x9ff   :  { %v1246_v37 = vsub.f32 %v1124_v9, %v1245_v36  ;;  %v2694_v9 = vld [vmem:[#allocation2 + $0x328] sm:$0xff]   ;;  %v2701_v36 = vld [vmem:[#allocation2 + $0x360] sm:$0xff]  }
 0xa01   :  { %v1247_v38 = vpack.c.bf16 %v1246_v37, %v1246_v37 }
 0xa03   :  { %2484 = vmatmul.mubr.bf16.vlgmr.msra.gmra.mrb[20].mxu0 %v1247_v38  ;;  %v2703_v38 = vld [vmem:[#allocation2 + $0x370] sm:$0xff]  }
 0xa04   :  { %2523 = vmatprep.mubr.msk.bf16.mxu0 %vm2837_vm0, %v2836_v0  ;;  %2508 = vmatpush3.bf16.msra.mxu0 %v2689_v4  ;;  %v2712_v4 = vld [vmem:[#allocation2 + $0x3b8] sm:$0xff]  }
 0xa05   :  { %2509 = vmatprep.subr.bf16.mxu0 %v2836_v0 }
 0xa08   :  { %2510 = vmatpush3.bf16.msra.mxu0 %v2690_v5 }
 0xa09   :  { %2511 = vmatprep.subr.bf16.mxu0 %v2836_v0 }
 0xa0c   :  { %2512 = vmatpush3.bf16.msra.mxu0 %v2691_v6 }
 0xa0d   :  { %2513 = vmatprep.subr.bf16.mxu0 %v2836_v0 }
 0xa10   :  { %2514 = vmatpush3.bf16.msra.mxu0 %v2692_v7 }
 0xa11   :  { %2515 = vmatprep.subr.bf16.mxu0 %v2836_v0 }
 0xa14   :  { %2516 = vmatpush3.bf16.msra.mxu0 %v2693_v8 }
 0xa15   :  { %2517 = vmatprep.subr.bf16.mxu0 %v2836_v0 }
 0xa18   :  { %2518 = vmatpush3.bf16.msra.mxu0 %v2694_v9 }
 0xa19   :  { %2519 = vmatprep.subr.bf16.mxu0 %v2836_v0 }
 0xa1c   :  { %2520 = vmatpush3.bf16.msra.mxu0 %v2695_v10 }
 0xa1d   :  { %2521 = vmatprep.subr.bf16.mxu0 %v2836_v0 }
 0xa20   :  { %2522 = vmatpush3.bf16.msra.mxu0 %v2696_v11 }
 0xa21   :  { %2547 = vmatprep.subr.bf16.mxu0 %v2836_v0 }
 0xad6   :  { %v1347_v47 = vpop.f32.mrb[20].mxu0 }
 0xad7   :  { %v1354_v48 = vand.u32 2147483647, %v1347_v47  ;;  %v2485_v49 = vpop.f32.mrb[21].mxu0  ;;  %v1353_v62 = vmax.f32 %v1347_v47, 0.0 }
 0xad8   :  { %v1350_v50 = vpop.f32.mrb[22].mxu0 }
 0xad9   :  { %v1355_v51 = vsub.f32 0.0, %v1354_v48  ;;  %v2486_v52 = vpop.f32.mrb[23].mxu0 }
 0xadb   :  { %v1356_v53 = vmul.f32 1.442695, %v1355_v51 }
 0xadd   :  { %2761 = vpow2.f32 %v1356_v53 }
 0xae7   :  { %v2762_v54 = vpop.eup %2761 }
 0xae8   :  { %v1358_v55 = vadd.f32 1.0, %v2762_v54  ;;  %v1361_v56 = vmul.f32 -0.5, %v2762_v54  ;;  %v1364_v58 = vand.u32 2147483647, %v2762_v54 }
 0xaea   :  { %2763 = vlog2.f32 %v1358_v55  ;;  %v1362_v57 = vadd.f32 1.0, %v1361_v56  ;;  %vm1365_vm11 = vcmp.lt.f32.partialorder %v1364_v58, 0.0004427343 }
 0xaec   :  { %v1363_v61 = vmul.f32 %v2762_v54, %v1362_v57 }
 0xaf4   :  { %v2764_v59 = vpop.eup %2763 }
 0xaf5   :  { %v1360_v60 = vmul.f32 0.6931472, %v2764_v59 }
 0xaf7   :  { %v1366_v63 = vsel %vm1365_vm11, %v1363_v61, %v1360_v60  ;;  %v2705_v60 = vld [vmem:[#allocation2 + $0x380] sm:$0xff]   ;;  %v2706_v61 = vld [vmem:[#allocation2 + $0x388] sm:$0xff]  }
 0xaf8   :  { %v1367_v1 = vadd.f32 %v1366_v63, %v1353_v62  ;;  %v2707_v62 = vld [vmem:[#allocation2 + $0x390] sm:$0xff]   ;;  %v2708_v63 = vld [vmem:[#allocation2 + $0x398] sm:$0xff]  }
 0xafa   :  { %v1368_v2 = vsub.f32 %v1246_v37, %v1367_v1  ;;  %v2702_v37 = vld [vmem:[#allocation2 + $0x368] sm:$0xff]   ;;  %v2709_v1 = vld [vmem:[#allocation2 + $0x3a0] sm:$0xff]  }
 0xafc   :  { %v1369_v3 = vpack.c.bf16 %v1368_v2, %v1368_v2 }
 0xafe   :  { %2504 = vmatmul.mubr.bf16.vlgmr.msra.gmra.mrb[20].mxu1 %v1369_v3  ;;  %v2711_v3 = vld [vmem:[#allocation2 + $0x3b0] sm:$0xff]  }
 0xaff   :  { %2543 = vmatprep.mubr.msk.bf16.mxu1 %vm2837_vm0, %v2836_v0  ;;  %2528 = vmatpush3.bf16.msra.mxu1 %v2697_v32  ;;  %v2720_v32 = vld [vmem:[#allocation2 + $0x3f8] sm:$0xff]  }
 0xb00   :  { %2529 = vmatprep.subr.bf16.mxu1 %v2836_v0 }
 0xb03   :  { %2530 = vmatpush3.bf16.msra.mxu1 %v2698_v33 }
 0xb04   :  { %2531 = vmatprep.subr.bf16.mxu1 %v2836_v0 }
 0xb07   :  { %2532 = vmatpush3.bf16.msra.mxu1 %v2699_v34 }
 0xb08   :  { %2533 = vmatprep.subr.bf16.mxu1 %v2836_v0 }
 0xb0b   :  { %2534 = vmatpush3.bf16.msra.mxu1 %v2700_v35 }
 0xb0c   :  { %2535 = vmatprep.subr.bf16.mxu1 %v2836_v0 }
 0xb0f   :  { %2536 = vmatpush3.bf16.msra.mxu1 %v2701_v36 }
 0xb10   :  { %2537 = vmatprep.subr.bf16.mxu1 %v2836_v0 }
 0xb13   :  { %2538 = vmatpush3.bf16.msra.mxu1 %v2702_v37 }
 0xb14   :  { %2539 = vmatprep.subr.bf16.mxu1 %v2836_v0 }
 0xb17   :  { %2540 = vmatpush3.bf16.msra.mxu1 %v2703_v38 }
 0xb18   :  { %2541 = vmatprep.subr.bf16.mxu1 %v2836_v0 }
 0xb1b   :  { %2542 = vmatpush3.bf16.msra.mxu1 %v2704_v39 }
 0xb1c   :  { %2567 = vmatprep.subr.bf16.mxu1 %v2836_v0 }
 0xbd1   :  { %v1469_v12 = vpop.f32.mrb[20].mxu1 }
 0xbd2   :  { %v1476_v13 = vand.u32 2147483647, %v1469_v12  ;;  %v2505_v14 = vpop.f32.mrb[21].mxu1  ;;  %v1475_v27 = vmax.f32 %v1469_v12, 0.0 }
 0xbd3   :  { %v1472_v15 = vpop.f32.mrb[22].mxu1 }
 0xbd4   :  { %v1477_v16 = vsub.f32 0.0, %v1476_v13  ;;  %v2506_v17 = vpop.f32.mrb[23].mxu1 }
 0xbd6   :  { %v1478_v18 = vmul.f32 1.442695, %v1477_v16 }
 0xbd8   :  { %2765 = vpow2.f32 %v1478_v18 }
 0xbe2   :  { %v2766_v19 = vpop.eup %2765 }
 0xbe3   :  { %v1480_v20 = vadd.f32 1.0, %v2766_v19  ;;  %v1483_v21 = vmul.f32 -0.5, %v2766_v19  ;;  %v1486_v23 = vand.u32 2147483647, %v2766_v19 }
 0xbe5   :  { %2767 = vlog2.f32 %v1480_v20  ;;  %v1484_v22 = vadd.f32 1.0, %v1483_v21  ;;  %vm1487_vm12 = vcmp.lt.f32.partialorder %v1486_v23, 0.0004427343 }
 0xbe7   :  { %v1485_v26 = vmul.f32 %v2766_v19, %v1484_v22 }
 0xbef   :  { %v2768_v24 = vpop.eup %2767 }
 0xbf0   :  { %v1482_v25 = vmul.f32 0.6931472, %v2768_v24 }
 0xbf2   :  { %v1488_v28 = vsel %vm1487_vm12, %v1485_v26, %v1482_v25  ;;  %v2713_v25 = vld [vmem:[#allocation2 + $0x3c0] sm:$0xff]   ;;  %v2714_v26 = vld [vmem:[#allocation2 + $0x3c8] sm:$0xff]  }
 0xbf3   :  { %v1489_v29 = vadd.f32 %v1488_v28, %v1475_v27  ;;  %v2715_v27 = vld [vmem:[#allocation2 + $0x3d0] sm:$0xff]   ;;  %v2716_v28 = vld [vmem:[#allocation2 + $0x3d8] sm:$0xff]  }
 0xbf5   :  { %v1490_v30 = vsub.f32 %v1368_v2, %v1489_v29  ;;  %v2710_v2 = vld [vmem:[#allocation2 + $0x3a8] sm:$0xff]   ;;  %v2717_v29 = vld [vmem:[#allocation2 + $0x3e0] sm:$0xff]  }
 0xbf7   :  { %v1491_v31 = vpack.c.bf16 %v1490_v30, %v1490_v30 }
 0xbf9   :  { %2524 = vmatmul.mubr.bf16.vlgmr.msra.gmra.mrb[24].mxu0 %v1491_v31  ;;  %v2719_v31 = vld [vmem:[#allocation2 + $0x3f0] sm:$0xff]  }
 0xbfa   :  { %2563 = vmatprep.mubr.msk.bf16.mxu0 %vm2837_vm0, %v2836_v0  ;;  %2548 = vmatpush3.bf16.msra.mxu0 %v2705_v60 }
 0xbfb   :  { %2549 = vmatprep.subr.bf16.mxu0 %v2836_v0 }
 0xbfe   :  { %2550 = vmatpush3.bf16.msra.mxu0 %v2706_v61 }
 0xbff   :  { %2551 = vmatprep.subr.bf16.mxu0 %v2836_v0 }
 0xc02   :  { %2552 = vmatpush3.bf16.msra.mxu0 %v2707_v62 }
 0xc03   :  { %2553 = vmatprep.subr.bf16.mxu0 %v2836_v0 }
 0xc06   :  { %2554 = vmatpush3.bf16.msra.mxu0 %v2708_v63 }
 0xc07   :  { %2555 = vmatprep.subr.bf16.mxu0 %v2836_v0 }
 0xc0a   :  { %2556 = vmatpush3.bf16.msra.mxu0 %v2709_v1 }
 0xc0b   :  { %2557 = vmatprep.subr.bf16.mxu0 %v2836_v0 }
 0xc0e   :  { %2558 = vmatpush3.bf16.msra.mxu0 %v2710_v2 }
 0xc0f   :  { %2559 = vmatprep.subr.bf16.mxu0 %v2836_v0 }
 0xc12   :  { %2560 = vmatpush3.bf16.msra.mxu0 %v2711_v3 }
 0xc13   :  { %2561 = vmatprep.subr.bf16.mxu0 %v2836_v0 }
 0xc16   :  { %2562 = vmatpush3.bf16.msra.mxu0 %v2712_v4 }
 0xccc   :  { %v1591_v40 = vpop.f32.mrb[24].mxu0 }
 0xccd   :  { %v1598_v41 = vand.u32 2147483647, %v1591_v40  ;;  %v2525_v42 = vpop.f32.mrb[25].mxu0  ;;  %v1597_v55 = vmax.f32 %v1591_v40, 0.0 }
 0xcce   :  { %v1594_v43 = vpop.f32.mrb[26].mxu0 }
 0xccf   :  { %v1599_v44 = vsub.f32 0.0, %v1598_v41  ;;  %v2526_v45 = vpop.f32.mrb[27].mxu0 }
 0xcd1   :  { %v1600_v46 = vmul.f32 1.442695, %v1599_v44 }
 0xcd3   :  { %2769 = vpow2.f32 %v1600_v46 }
 0xcdd   :  { %v2770_v47 = vpop.eup %2769 }
 0xcde   :  { %v1602_v48 = vadd.f32 1.0, %v2770_v47  ;;  %v1605_v49 = vmul.f32 -0.5, %v2770_v47  ;;  %v1608_v51 = vand.u32 2147483647, %v2770_v47 }
 0xce0   :  { %2771 = vlog2.f32 %v1602_v48  ;;  %v1606_v50 = vadd.f32 1.0, %v1605_v49  ;;  %vm1609_vm13 = vcmp.lt.f32.partialorder %v1608_v51, 0.0004427343 }
 0xce2   :  { %v1607_v54 = vmul.f32 %v2770_v47, %v1606_v50 }
 0xcea   :  { %v2772_v52 = vpop.eup %2771 }
 0xceb   :  { %v1604_v53 = vmul.f32 0.6931472, %v2772_v52 }
 0xced   :  { %v1610_v56 = vsel %vm1609_vm13, %v1607_v54, %v1604_v53 }
 0xcee   :  { %v1611_v57 = vadd.f32 %v1610_v56, %v1597_v55 }
 0xcf0   :  { %v1612_v58 = vsub.f32 %v1490_v30, %v1611_v57  ;;  %v2718_v30 = vld [vmem:[#allocation2 + $0x3e8] sm:$0xff]  }
 0xcf2   :  { %v1613_v59 = vpack.c.bf16 %v1612_v58, %v1612_v58 }
 0xcf4   :  { %2544 = vmatmul.mubr.bf16.vlgmr.msra.gmra.mrb[24].mxu1 %v1613_v59 }
 0xcf5   :  { %2583 = vmatprep.mubr.msk.bf16.mxu1 %vm2837_vm0, %v2836_v0  ;;  %2568 = vmatpush3.bf16.msra.mxu1 %v2713_v25 }
 0xcf6   :  { %2569 = vmatprep.subr.bf16.mxu1 %v2836_v0 }
 0xcf9   :  { %2570 = vmatpush3.bf16.msra.mxu1 %v2714_v26 }
 0xcfa   :  { %2571 = vmatprep.subr.bf16.mxu1 %v2836_v0 }
 0xcfd   :  { %2572 = vmatpush3.bf16.msra.mxu1 %v2715_v27 }
 0xcfe   :  { %2573 = vmatprep.subr.bf16.mxu1 %v2836_v0 }
 0xd01   :  { %2574 = vmatpush3.bf16.msra.mxu1 %v2716_v28 }
 0xd02   :  { %2575 = vmatprep.subr.bf16.mxu1 %v2836_v0 }
 0xd05   :  { %2576 = vmatpush3.bf16.msra.mxu1 %v2717_v29 }
 0xd06   :  { %2577 = vmatprep.subr.bf16.mxu1 %v2836_v0 }
 0xd09   :  { %2578 = vmatpush3.bf16.msra.mxu1 %v2718_v30 }
 0xd0a   :  { %2579 = vmatprep.subr.bf16.mxu1 %v2836_v0 }
 0xd0d   :  { %2580 = vmatpush3.bf16.msra.mxu1 %v2719_v31 }
 0xd0e   :  { %2581 = vmatprep.subr.bf16.mxu1 %v2836_v0 }
 0xd11   :  { %2582 = vmatpush3.bf16.msra.mxu1 %v2720_v32 }
 0xdc7   :  { %v1713_v5 = vpop.f32.mrb[24].mxu1 }
 0xdc8   :  { %v1720_v6 = vand.u32 2147483647, %v1713_v5  ;;  %v2545_v7 = vpop.f32.mrb[25].mxu1  ;;  %v1719_v20 = vmax.f32 %v1713_v5, 0.0 }
 0xdc9   :  { %v1716_v8 = vpop.f32.mrb[26].mxu1 }
 0xdca   :  { %v1721_v9 = vsub.f32 0.0, %v1720_v6  ;;  %v2546_v10 = vpop.f32.mrb[27].mxu1 }
 0xdcc   :  { %v1722_v11 = vmul.f32 1.442695, %v1721_v9 }
 0xdce   :  { %2773 = vpow2.f32 %v1722_v11 }
 0xdd8   :  { %v2774_v12 = vpop.eup %2773 }
 0xdd9   :  { %v1724_v13 = vadd.f32 1.0, %v2774_v12  ;;  %v1727_v14 = vmul.f32 -0.5, %v2774_v12  ;;  %v1730_v16 = vand.u32 2147483647, %v2774_v12 }
 0xddb   :  { %2775 = vlog2.f32 %v1724_v13  ;;  %v1728_v15 = vadd.f32 1.0, %v1727_v14  ;;  %vm1731_vm14 = vcmp.lt.f32.partialorder %v1730_v16, 0.0004427343 }
 0xddd   :  { %v1729_v19 = vmul.f32 %v2774_v12, %v1728_v15 }
 0xde5   :  { %v2776_v17 = vpop.eup %2775 }
 0xde6   :  { %v1726_v18 = vmul.f32 0.6931472, %v2776_v17 }
 0xde8   :  { %v1732_v21 = vsel %vm1731_vm14, %v1729_v19, %v1726_v18 }
 0xde9   :  { %v1733_v22 = vadd.f32 %v1732_v21, %v1719_v20 }
 0xdeb   :  { %v1734_v23 = vsub.f32 %v1612_v58, %v1733_v22 }
 0xded   :  { %v1735_v24 = vpack.c.bf16 %v1734_v23, %v1734_v23 }
 0xdef   :  { %2564 = vmatmul.mubr.bf16.vlgmr.msra.gmra.mrb[28].mxu0 %v1735_v24 }
 0xec2   :  { %v1835_v33 = vpop.f32.mrb[28].mxu0 }
 0xec3   :  { %v1842_v34 = vand.u32 2147483647, %v1835_v33  ;;  %v2565_v35 = vpop.f32.mrb[29].mxu0  ;;  %v1841_v0 = vmax.f32 %v1835_v33, 0.0 }
 0xec4   :  { %v1838_v36 = vpop.f32.mrb[30].mxu0 }
 0xec5   :  { %v1843_v37 = vsub.f32 0.0, %v1842_v34  ;;  %v2566_v38 = vpop.f32.mrb[31].mxu0 }
 0xec7   :  { %v1844_v39 = vmul.f32 1.442695, %v1843_v37 }
 0xec9   :  { %2777 = vpow2.f32 %v1844_v39 }
 0xed3   :  { %v2778_v40 = vpop.eup %2777 }
 0xed4   :  { %v1846_v41 = vadd.f32 1.0, %v2778_v40  ;;  %v1849_v42 = vmul.f32 -0.5, %v2778_v40  ;;  %v1852_v44 = vand.u32 2147483647, %v2778_v40 }
 0xed6   :  { %2779 = vlog2.f32 %v1846_v41  ;;  %v1850_v43 = vadd.f32 1.0, %v1849_v42  ;;  %vm1853_vm15 = vcmp.lt.f32.partialorder %v1852_v44, 0.0004427343 }
 0xed8   :  { %v1851_v47 = vmul.f32 %v2778_v40, %v1850_v43 }
 0xee0   :  { %v2780_v45 = vpop.eup %2779 }
 0xee1   :  { %v1848_v46 = vmul.f32 0.6931472, %v2780_v45 }
 0xee3   :  { %v1854_v48 = vsel %vm1853_vm15, %v1851_v47, %v1848_v46 }
 0xee4   :  { %v1855_v49 = vadd.f32 %v1854_v48, %v1841_v0 }
 0xee6   :  { %v1856_v50 = vsub.f32 %v1734_v23, %v1855_v49 }
 0xee8   :  { %v1857_v51 = vpack.c.bf16 %v1856_v50, %v1856_v50 }
 0xeea   :  { %2584 = vmatmul.mubr.bf16.vlgmr.msra.gmra.mrb[28].mxu1 %v1857_v51 }
 0xfbd   :  { %v1957_v52 = vpop.f32.mrb[28].mxu1 }
 0xfbe   :  { %v1964_v53 = vand.u32 2147483647, %v1957_v52  ;;  %v2585_v54 = vpop.f32.mrb[29].mxu1  ;;  %v1963_v4 = vmax.f32 %v1957_v52, 0.0 }
 0xfbf   :  { %v1960_v55 = vpop.f32.mrb[30].mxu1 }
 0xfc0   :  { %v1965_v56 = vsub.f32 0.0, %v1964_v53  ;;  %v2586_v57 = vpop.f32.mrb[31].mxu1 }
 0xfc2   :  { %v1966_v58 = vmul.f32 1.442695, %v1965_v56 }
 0xfc4   :  { %2781 = vpow2.f32 %v1966_v58 }
 0xfce   :  { %v2782_v59 = vpop.eup %2781 }
 0xfcf   :  { %v1968_v60 = vadd.f32 1.0, %v2782_v59  ;;  %v1971_v61 = vmul.f32 -0.5, %v2782_v59  ;;  %v1974_v63 = vand.u32 2147483647, %v2782_v59 }
 0xfd1   :  { %2783 = vlog2.f32 %v1968_v60  ;;  %v1972_v62 = vadd.f32 1.0, %v1971_v61  ;;  %vm1975_vm0 = vcmp.lt.f32.partialorder %v1974_v63, 0.0004427343 }
 0xfd3   :  { %v1973_v3 = vmul.f32 %v2782_v59, %v1972_v62 }
 0xfdb   :  { %v2784_v1 = vpop.eup %2783 }
 0xfdc   :  { %v1970_v2 = vmul.f32 0.6931472, %v2784_v1 }
 0xfde   :  { %v1976_v5 = vsel %vm1975_vm0, %v1973_v3, %v1970_v2 }
 0xfdf   :  { %v1977_v6 = vadd.f32 %v1976_v5, %v1963_v4 }
 0xfe1   :  { %v1978_v7 = vsub.f32 %v1856_v50, %v1977_v6 }
 0xfe3   :  { %1979 = vst [vmem:[#allocation5] sm:$0xff] %v1978_v7 }
 0xfe4   :  { %2818 = shalt.err (!%p2815_p12)
}
 0xfe5   :  { %s2819_s28 = scalar_lea.hbm %s3043_s2, 128 }
 0xfe6   :  { %p2820_p13 = scmp.ne.s32.totalorder %s3043_s2, %s2819_s28  ;;  %p2823_p0 = scmp.lt.u32.totalorder %s2819_s28, %s3043_s2 }
 0xfe8   :  { %p2825_p1 = pnand %p2823_p0, %p2820_p13 }
 0xfea   :  { %2828 = shalt.err (!%p2825_p1)
}
 0xfeb   :  { %1989 = dma.vmem_to_hbm [thread:$0]  %s1987_s24, 128, %s3043_s2, [#allocation4]  }
 0xfec   :  { %2831 = dma.done.wait [#allocation4], 128  }
 0xfed   :  { %2832 = vsyncadd [#allocation4], 4294967168 }
 0xfee   :  { %1993 = vsyncpa [#allocation3], 1 }
 0xfef   :  { %1994 = vsyncpa [#allocation4], 1 }

</bundles_post_ra>
